<compile_context>
chip_gen: v7x
topology: tpu7x:2x2x1
jax: 0.10.0
libtpu: 0.0.40
codegen_flags: <defaults>
</compile_context>

<pallas_src>
import functools

import jax
import jax.numpy as jnp
import numpy as np
from jax.experimental import pallas as pl
from jax.experimental.pallas import tpu as pltpu


# ----------------------------- Pallas kernel -------------------------------

def make_fused_lstm_kernel(num_layers, hidden_size):
    """Kernel computing `num_layers` stacked LSTM layers + Linear(H, 1).

    Ref order:
      x_ref                              (T, B, input_size)  time-major input
      layer 0:  wih0 (in, 4H), whh0 (H, 4H), b0 (1, 4H)
      layer l>=1: wcat_l (2H, 4H) = [wih_l^T ; whh_l^T],  b_l (1, 4H)
      fc_w_ref (1, H),  fc_b_ref (1, 1)
      out_ref  (B, 1)
    Gate order follows PyTorch: i, f, g, o.  Everything stays on-chip; only the
    (B, 1) result is written out.
    """
    H = hidden_size

    def cell_update(gates, c, gate_scale):
        # Single EUP push for all four gate activations:
        #   sigmoid(x) = 0.5 * (1 + tanh(0.5 * x))
        # gate_scale (hoisted) pre-scales the i/f/o quadrants by 0.5 and leaves
        # the g quadrant at 1.0, so one full-width tanh on the (B, 4H) vreg
        # yields both the sigmoids and tanh(g).
        tz = jnp.tanh(gates * gate_scale)
        s = 0.5 + 0.5 * tz                      # sigmoid for i/f/o quadrants
        i = s[:, 0 * H:1 * H]
        f = s[:, 1 * H:2 * H]
        g = tz[:, 2 * H:3 * H]                  # tanh for the g quadrant
        o = s[:, 3 * H:4 * H]
        c_new = f * c + i * g
        h_new = o * jnp.tanh(c_new)
        return h_new, c_new

    def kernel(*refs):
        x_ref = refs[0]
        idx = 1
        layer_refs = []
        for l in range(num_layers):
            if l == 0:
                layer_refs.append((refs[idx], refs[idx + 1], refs[idx + 2]))
                idx += 3
            else:
                layer_refs.append((refs[idx], refs[idx + 1]))
                idx += 2
        fc_w_ref = refs[idx]
        fc_b_ref = refs[idx + 1]
        out_ref = refs[idx + 2]

        T, B, in_dim = x_ref.shape

        # Hoisted gate scale: 0.5 on i/f/o lanes, 1.0 on g lanes [2H, 3H).
        lanes = jax.lax.broadcasted_iota(jnp.int32, (1, 4 * H), 1)
        g_mask = jnp.logical_and(lanes >= 2 * H, lanes < 3 * H)
        gate_scale = jnp.where(g_mask, jnp.float32(1.0), jnp.float32(0.5))

        # Layer-0 input projection hoisted out of the recurrence: one big
        # (T*B, in) @ (in, 4H) MXU matmul instead of T tiny ones on the
        # latency-critical path.
        wih0 = layer_refs[0][0][...]
        whh0 = layer_refs[0][1][...]
        b0 = layer_refs[0][2][...]
        x = x_ref[...]                                       # (T, B, in)
        pregates0 = (
            jnp.dot(x.reshape(T * B, in_dim), wih0,
                    preferred_element_type=jnp.float32) + b0
        ).reshape(T, B, 4 * H)

        # Fused [wih^T ; whh^T] weights / biases for layers >= 1 (loaded once).
        wcats = [layer_refs[l][0][...] for l in range(1, num_layers)]
        bs = [layer_refs[l][1][...] for l in range(1, num_layers)]

        h = [jnp.zeros((B, H), jnp.float32) for _ in range(num_layers)]
        c = [jnp.zeros((B, H), jnp.float32) for _ in range(num_layers)]

        # Wavefront over time.  T is small and fixed, so a static unroll gives
        # the scheduler visibility to overlap layer l's step t+1 with layer
        # l+1's step t (independent chains), plus MXU / EUP / VPU co-issue.
        # For long sequences this should become a grid axis over time chunks
        # with h/c carried in VMEM scratch (accumulator pattern).
        for t in range(T):
            gates0 = pregates0[t] + jnp.dot(
                h[0], whh0, preferred_element_type=jnp.float32)      # (B, 4H)
            h[0], c[0] = cell_update(gates0, c[0], gate_scale)
            for l in range(1, num_layers):
                # One MXU push covers both the input and recurrent projections.
                lhs = jnp.concatenate([h[l - 1], h[l]], axis=-1)     # (B, 2H)
                gates = jnp.dot(lhs, wcats[l - 1],
                                preferred_element_type=jnp.float32) + bs[l - 1]
                h[l], c[l] = cell_update(gates, c[l], gate_scale)
            # TODO(synk): nn.LSTM inter-layer dropout is training-only; inference omits it.

        # Final Linear(H, 1) on the last timestep.  Single-column output, so a
        # VPU multiply + lane reduction beats an MXU push for one column.
        h_last = h[num_layers - 1]                                   # (B, H)
        out = jnp.sum(h_last * fc_w_ref[...], axis=-1, keepdims=True) + fc_b_ref[...]
        out_ref[...] = out.astype(out_ref.dtype)

    return kernel


# ------------------------------- Wrapper -----------------------------------

def lstm_forward(x, layer_params, fc_w, fc_b):
    """x: (B, T, input_size) float32 -> (B, 1) float32."""
    B, T, _ = x.shape
    num_layers = len(layer_params)
    H = fc_w.shape[1]

    # Pad batch to a multiple of 8 so f32 sublanes / MXU rows are filled.
    # (Padding rows are zeros; their outputs are sliced off below.)
    B_pad = ((B + 7) // 8) * 8
    x_tm = jnp.transpose(x, (1, 0, 2)).astype(jnp.float32)   # (T, B, in) time-major
    if B_pad != B:
        x_tm = jnp.pad(x_tm, ((0, 0), (0, B_pad - B), (0, 0)))

    flat_params = []
    for p in layer_params:
        flat_params.extend(p)

    vmem = pl.BlockSpec(memory_space=pltpu.MemorySpace.VMEM)
    n_inputs = 1 + len(flat_params) + 2

    # No grid: the whole problem fits in VMEM.  For batch-heavy inference add a
    # leading batch-block grid axis with dimension_semantics=("parallel",) so
    # v7x's second TensorCore gets used (the time recurrence itself is serial).
    out = pl.pallas_call(
        make_fused_lstm_kernel(num_layers, H),
        out_shape=jax.ShapeDtypeStruct((B_pad, 1), jnp.float32),
        in_specs=[vmem] * n_inputs,
        out_specs=vmem,
        compiler_params=pltpu.CompilerParams(
            vmem_limit_bytes=32 * 1024 * 1024),  # explicit budget; safe on v5e/v6e/v7x
    )(x_tm, *flat_params, fc_w, fc_b)
    return out[:B]


# --------------------------- Parameters & reference -------------------------

def init_params(key, input_size, hidden_size, num_layers):
    """PyTorch-shaped init U(-1/sqrt(H), 1/sqrt(H)) for nn.LSTM + nn.Linear."""
    bound = 1.0 / np.sqrt(hidden_size)
    raw_layers = []
    in_dim = input_size
    for _ in range(num_layers):
        key, k1, k2, k3, k4 = jax.random.split(key, 5)
        w_ih = jax.random.uniform(k1, (4 * hidden_size, in_dim),
                                  minval=-bound, maxval=bound, dtype=jnp.float32)
        w_hh = jax.random.uniform(k2, (4 * hidden_size, hidden_size),
                                  minval=-bound, maxval=bound, dtype=jnp.float32)
        b_ih = jax.random.uniform(k3, (4 * hidden_size,),
                                  minval=-bound, maxval=bound, dtype=jnp.float32)
        b_hh = jax.random.uniform(k4, (4 * hidden_size,),
                                  minval=-bound, maxval=bound, dtype=jnp.float32)
        raw_layers.append((w_ih, w_hh, b_ih, b_hh))
        in_dim = hidden_size

    key, k5, k6 = jax.random.split(key, 3)
    fc_w = jax.random.uniform(k5, (1, hidden_size),
                              minval=-bound, maxval=bound, dtype=jnp.float32)
    fc_b = jax.random.uniform(k6, (1,),
                              minval=-bound, maxval=bound, dtype=jnp.float32)
    return raw_layers, fc_w, fc_b


def prepare_params(raw_layers, fc_w, fc_b):
    """Kernel layout: pre-transposed weights, fused b_ih+b_hh; for layers >= 1 the
    input and recurrent weights are stacked so one (B,2H)@(2H,4H) MXU push covers
    both projections.  (For v6e/v7x, cast these to bf16 here to feed the MXU.)"""
    layer_params = []
    for l, (w_ih, w_hh, b_ih, b_hh) in enumerate(raw_layers):
        b = (b_ih + b_hh).reshape(1, -1)
        if l == 0:
            layer_params.append((w_ih.T, w_hh.T, b))
        else:
            layer_params.append((jnp.concatenate([w_ih.T, w_hh.T], axis=0), b))
    return layer_params, fc_w, fc_b.reshape(1, 1)             # (1, H), (1, 1)


def lstm_ref(x, raw_layers, fc_w, fc_b):
    """Pure-JAX reference for nn.LSTM(batch_first=True) + Linear(H, 1) inference."""
    B, T, _ = x.shape
    seq = x
    for (w_ih, w_hh, b_ih, b_hh) in raw_layers:
        H = w_hh.shape[1]
        h = jnp.zeros((B, H), jnp.float32)
        c = jnp.zeros((B, H), jnp.float32)
        outs = []
        for t in range(T):
            gates = seq[:, t, :] @ w_ih.T + h @ w_hh.T + b_ih + b_hh
            i, f, g, o = jnp.split(gates, 4, axis=-1)
            i, f, o = jax.nn.sigmoid(i), jax.nn.sigmoid(f), jax.nn.sigmoid(o)
            g = jnp.tanh(g)
            c = f * c + i * g
            h = o * jnp.tanh(c)
            outs.append(h)
        seq = jnp.stack(outs, axis=1)
    return seq[:, -1, :] @ fc_w.T + fc_b


# ---------------------------------- Main ------------------------------------

if __name__ == "__main__":
    # Small config consistent with the module: LSTM(input_size, hidden, num_layers) + Linear(hidden, 1)
    input_size = 4
    hidden_size = 32
    num_layers = 2
    batch = 2
    seq_len = 8

    key = jax.random.PRNGKey(0)
    key, pkey, xkey = jax.random.split(key, 3)
    raw_layers, fc_w, fc_b = init_params(pkey, input_size, hidden_size, num_layers)
    layer_params, fc_w_k, fc_b_k = prepare_params(raw_layers, fc_w, fc_b)

    x = jax.random.normal(xkey, (batch, seq_len, input_size), dtype=jnp.float32)

    fwd = jax.jit(functools.partial(lstm_forward, layer_params=layer_params,
                                    fc_w=fc_w_k, fc_b=fc_b_k))
    out = fwd(x)
    jax.block_until_ready(out)

    ref = lstm_ref(x, raw_layers, fc_w, fc_b)

    assert out.shape == (batch, 1), out.shape
    assert out.dtype == jnp.float32
    assert bool(jnp.all(jnp.isfinite(out)))
    max_err = float(jnp.max(jnp.abs(out - ref)))
    assert max_err < 1e-3, f"kernel deviates from reference: max abs err = {max_err}"
    print("KERNEL_OK")
</pallas_src>

<mosaic_0001>
module attributes {stable_mosaic.version = 11 : i64} {
  func.func @kernel(%arg0: memref<8x8x4xf32, #tpu.memory_space<vmem>>, %arg1: memref<4x128xf32, #tpu.memory_space<vmem>>, %arg2: memref<32x128xf32, #tpu.memory_space<vmem>>, %arg3: memref<1x128xf32, #tpu.memory_space<vmem>>, %arg4: memref<64x128xf32, #tpu.memory_space<vmem>>, %arg5: memref<1x128xf32, #tpu.memory_space<vmem>>, %arg6: memref<1x32xf32, #tpu.memory_space<vmem>>, %arg7: memref<1x1xf32, #tpu.memory_space<vmem>>, %arg8: memref<8x1xf32, #tpu.memory_space<vmem>>) attributes {dimension_semantics = [], scalar_prefetch = 0 : i64, scratch_operands = 0 : i64, tpu.core_type = #tpu.core_type<tc>} {
    %0 = tpu.iota {dimensions = array<i32: 1>} : vector<1x128xi32>
    %c64_i32 = arith.constant 64 : i32
    %1 = vector.broadcast %c64_i32 : i32 to vector<1x128xi32>
    %2 = arith.cmpi sge, %0, %1 : vector<1x128xi32>
    %c96_i32 = arith.constant 96 : i32
    %3 = vector.broadcast %c96_i32 : i32 to vector<1x128xi32>
    %4 = arith.cmpi slt, %0, %3 : vector<1x128xi32>
    %5 = arith.andi %2, %4 : vector<1x128xi1>
    %cst = arith.constant 1.000000e+00 : f32
    %cst_0 = arith.constant 5.000000e-01 : f32
    %6 = vector.broadcast %cst : f32 to vector<1x128xf32>
    %7 = vector.broadcast %cst_0 : f32 to vector<1x128xf32>
    %8 = arith.select %5, %6, %7 : vector<1x128xi1>, vector<1x128xf32>
    %c0 = arith.constant 0 : index
    %c0_1 = arith.constant 0 : index
    %9 = vector.load %arg1[%c0, %c0_1] : memref<4x128xf32, #tpu.memory_space<vmem>>, vector<4x128xf32>
    %c0_2 = arith.constant 0 : index
    %c0_3 = arith.constant 0 : index
    %10 = vector.load %arg2[%c0_2, %c0_3] : memref<32x128xf32, #tpu.memory_space<vmem>>, vector<32x128xf32>
    %c0_4 = arith.constant 0 : index
    %c0_5 = arith.constant 0 : index
    %11 = vector.load %arg3[%c0_4, %c0_5] : memref<1x128xf32, #tpu.memory_space<vmem>>, vector<1x128xf32>
    %c0_6 = arith.constant 0 : index
    %c0_7 = arith.constant 0 : index
    %c0_8 = arith.constant 0 : index
    %12 = vector.load %arg0[%c0_6, %c0_7, %c0_8] : memref<8x8x4xf32, #tpu.memory_space<vmem>>, vector<8x8x4xf32>
    %13 = vector.shape_cast %12 : vector<8x8x4xf32> to vector<64x4xf32>
    %cst_9 = arith.constant dense<0.000000e+00> : vector<64x128xf32>
    %14 = tpu.matmul %13, %9, %cst_9 {dimension_numbers = #tpu.dot_dimension_numbers<[1], [0], [0], [1], [0, 0, 1, 1], [], []>} : vector<64x4xf32>, vector<4x128xf32>, vector<64x128xf32> -> vector<64x128xf32>
    %15 = vector.broadcast %11 : vector<1x128xf32> to vector<64x128xf32>
    %16 = arith.addf %14, %15 : vector<64x128xf32>
    %17 = vector.shape_cast %16 : vector<64x128xf32> to vector<8x8x128xf32>
    %c0_10 = arith.constant 0 : index
    %c0_11 = arith.constant 0 : index
    %18 = vector.load %arg4[%c0_10, %c0_11] : memref<64x128xf32, #tpu.memory_space<vmem>>, vector<64x128xf32>
    %c0_12 = arith.constant 0 : index
    %c0_13 = arith.constant 0 : index
    %19 = vector.load %arg5[%c0_12, %c0_13] : memref<1x128xf32, #tpu.memory_space<vmem>>, vector<1x128xf32>
    %cst_14 = arith.constant 0.000000e+00 : f32
    %20 = vector.broadcast %cst_14 : f32 to vector<8x32xf32>
    %cst_15 = arith.constant 0.000000e+00 : f32
    %21 = vector.broadcast %cst_15 : f32 to vector<8x32xf32>
    %cst_16 = arith.constant 0.000000e+00 : f32
    %22 = vector.broadcast %cst_16 : f32 to vector<8x32xf32>
    %cst_17 = arith.constant 0.000000e+00 : f32
    %23 = vector.broadcast %cst_17 : f32 to vector<8x32xf32>
    %24 = vector.extract_strided_slice %17 {offsets = [0, 0, 0], sizes = [1, 8, 128], strides = [1, 1, 1]} : vector<8x8x128xf32> to vector<1x8x128xf32>
    %25 = vector.shape_cast %24 : vector<1x8x128xf32> to vector<8x128xf32>
    %cst_18 = arith.constant dense<0.000000e+00> : vector<8x128xf32>
    %26 = tpu.matmul %20, %10, %cst_18 {dimension_numbers = #tpu.dot_dimension_numbers<[1], [0], [0], [1], [0, 0, 1, 1], [], []>} : vector<8x32xf32>, vector<32x128xf32>, vector<8x128xf32> -> vector<8x128xf32>
    %27 = arith.addf %25, %26 : vector<8x128xf32>
    %28 = vector.broadcast %8 : vector<1x128xf32> to vector<8x128xf32>
    %29 = arith.mulf %27, %28 : vector<8x128xf32>
    %30 = math.tanh %29 : vector<8x128xf32>
    %cst_19 = arith.constant 5.000000e-01 : f32
    %31 = vector.broadcast %cst_19 : f32 to vector<8x128xf32>
    %32 = arith.mulf %31, %30 : vector<8x128xf32>
    %cst_20 = arith.constant 5.000000e-01 : f32
    %33 = vector.broadcast %cst_20 : f32 to vector<8x128xf32>
    %34 = arith.addf %33, %32 : vector<8x128xf32>
    %35 = vector.extract_strided_slice %34 {offsets = [0, 0], sizes = [8, 32], strides = [1, 1]} : vector<8x128xf32> to vector<8x32xf32>
    %36 = vector.extract_strided_slice %34 {offsets = [0, 32], sizes = [8, 32], strides = [1, 1]} : vector<8x128xf32> to vector<8x32xf32>
    %37 = vector.extract_strided_slice %30 {offsets = [0, 64], sizes = [8, 32], strides = [1, 1]} : vector<8x128xf32> to vector<8x32xf32>
    %38 = vector.extract_strided_slice %34 {offsets = [0, 96], sizes = [8, 32], strides = [1, 1]} : vector<8x128xf32> to vector<8x32xf32>
    %39 = arith.mulf %36, %22 : vector<8x32xf32>
    %40 = arith.mulf %35, %37 : vector<8x32xf32>
    %41 = arith.addf %39, %40 : vector<8x32xf32>
    %42 = math.tanh %41 : vector<8x32xf32>
    %43 = arith.mulf %38, %42 : vector<8x32xf32>
    %44 = tpu.concatenate %43, %21 in 1 : vector<8x32xf32>, vector<8x32xf32> -> vector<8x64xf32>
    %cst_21 = arith.constant dense<0.000000e+00> : vector<8x128xf32>
    %45 = tpu.matmul %44, %18, %cst_21 {dimension_numbers = #tpu.dot_dimension_numbers<[1], [0], [0], [1], [0, 0, 1, 1], [], []>} : vector<8x64xf32>, vector<64x128xf32>, vector<8x128xf32> -> vector<8x128xf32>
    %46 = vector.broadcast %19 : vector<1x128xf32> to vector<8x128xf32>
    %47 = arith.addf %45, %46 : vector<8x128xf32>
    %48 = vector.broadcast %8 : vector<1x128xf32> to vector<8x128xf32>
    %49 = arith.mulf %47, %48 : vector<8x128xf32>
    %50 = math.tanh %49 : vector<8x128xf32>
    %cst_22 = arith.constant 5.000000e-01 : f32
    %51 = vector.broadcast %cst_22 : f32 to vector<8x128xf32>
    %52 = arith.mulf %51, %50 : vector<8x128xf32>
    %cst_23 = arith.constant 5.000000e-01 : f32
    %53 = vector.broadcast %cst_23 : f32 to vector<8x128xf32>
    %54 = arith.addf %53, %52 : vector<8x128xf32>
    %55 = vector.extract_strided_slice %54 {offsets = [0, 0], sizes = [8, 32], strides = [1, 1]} : vector<8x128xf32> to vector<8x32xf32>
    %56 = vector.extract_strided_slice %54 {offsets = [0, 32], sizes = [8, 32], strides = [1, 1]} : vector<8x128xf32> to vector<8x32xf32>
    %57 = vector.extract_strided_slice %50 {offsets = [0, 64], sizes = [8, 32], strides = [1, 1]} : vector<8x128xf32> to vector<8x32xf32>
    %58 = vector.extract_strided_slice %54 {offsets = [0, 96], sizes = [8, 32], strides = [1, 1]} : vector<8x128xf32> to vector<8x32xf32>
    %59 = arith.mulf %56, %23 : vector<8x32xf32>
    %60 = arith.mulf %55, %57 : vector<8x32xf32>
    %61 = arith.addf %59, %60 : vector<8x32xf32>
    %62 = math.tanh %61 : vector<8x32xf32>
    %63 = arith.mulf %58, %62 : vector<8x32xf32>
    %64 = vector.extract_strided_slice %17 {offsets = [1, 0, 0], sizes = [1, 8, 128], strides = [1, 1, 1]} : vector<8x8x128xf32> to vector<1x8x128xf32>
    %65 = vector.shape_cast %64 : vector<1x8x128xf32> to vector<8x128xf32>
    %cst_24 = arith.constant dense<0.000000e+00> : vector<8x128xf32>
    %66 = tpu.matmul %43, %10, %cst_24 {dimension_numbers = #tpu.dot_dimension_numbers<[1], [0], [0], [1], [0, 0, 1, 1], [], []>} : vector<8x32xf32>, vector<32x128xf32>, vector<8x128xf32> -> vector<8x128xf32>
    %67 = arith.addf %65, %66 : vector<8x128xf32>
    %68 = vector.broadcast %8 : vector<1x128xf32> to vector<8x128xf32>
    %69 = arith.mulf %67, %68 : vector<8x128xf32>
    %70 = math.tanh %69 : vector<8x128xf32>
    %cst_25 = arith.constant 5.000000e-01 : f32
    %71 = vector.broadcast %cst_25 : f32 to vector<8x128xf32>
    %72 = arith.mulf %71, %70 : vector<8x128xf32>
    %cst_26 = arith.constant 5.000000e-01 : f32
    %73 = vector.broadcast %cst_26 : f32 to vector<8x128xf32>
    %74 = arith.addf %73, %72 : vector<8x128xf32>
    %75 = vector.extract_strided_slice %74 {offsets = [0, 0], sizes = [8, 32], strides = [1, 1]} : vector<8x128xf32> to vector<8x32xf32>
    %76 = vector.extract_strided_slice %74 {offsets = [0, 32], sizes = [8, 32], strides = [1, 1]} : vector<8x128xf32> to vector<8x32xf32>
    %77 = vector.extract_strided_slice %70 {offsets = [0, 64], sizes = [8, 32], strides = [1, 1]} : vector<8x128xf32> to vector<8x32xf32>
    %78 = vector.extract_strided_slice %74 {offsets = [0, 96], sizes = [8, 32], strides = [1, 1]} : vector<8x128xf32> to vector<8x32xf32>
    %79 = arith.mulf %76, %41 : vector<8x32xf32>
    %80 = arith.mulf %75, %77 : vector<8x32xf32>
    %81 = arith.addf %79, %80 : vector<8x32xf32>
    %82 = math.tanh %81 : vector<8x32xf32>
    %83 = arith.mulf %78, %82 : vector<8x32xf32>
    %84 = tpu.concatenate %83, %63 in 1 : vector<8x32xf32>, vector<8x32xf32> -> vector<8x64xf32>
    %cst_27 = arith.constant dense<0.000000e+00> : vector<8x128xf32>
    %85 = tpu.matmul %84, %18, %cst_27 {dimension_numbers = #tpu.dot_dimension_numbers<[1], [0], [0], [1], [0, 0, 1, 1], [], []>} : vector<8x64xf32>, vector<64x128xf32>, vector<8x128xf32> -> vector<8x128xf32>
    %86 = vector.broadcast %19 : vector<1x128xf32> to vector<8x128xf32>
    %87 = arith.addf %85, %86 : vector<8x128xf32>
    %88 = vector.broadcast %8 : vector<1x128xf32> to vector<8x128xf32>
    %89 = arith.mulf %87, %88 : vector<8x128xf32>
    %90 = math.tanh %89 : vector<8x128xf32>
    %cst_28 = arith.constant 5.000000e-01 : f32
    %91 = vector.broadcast %cst_28 : f32 to vector<8x128xf32>
    %92 = arith.mulf %91, %90 : vector<8x128xf32>
    %cst_29 = arith.constant 5.000000e-01 : f32
    %93 = vector.broadcast %cst_29 : f32 to vector<8x128xf32>
    %94 = arith.addf %93, %92 : vector<8x128xf32>
    %95 = vector.extract_strided_slice %94 {offsets = [0, 0], sizes = [8, 32], strides = [1, 1]} : vector<8x128xf32> to vector<8x32xf32>
    %96 = vector.extract_strided_slice %94 {offsets = [0, 32], sizes = [8, 32], strides = [1, 1]} : vector<8x128xf32> to vector<8x32xf32>
    %97 = vector.extract_strided_slice %90 {offsets = [0, 64], sizes = [8, 32], strides = [1, 1]} : vector<8x128xf32> to vector<8x32xf32>
    %98 = vector.extract_strided_slice %94 {offsets = [0, 96], sizes = [8, 32], strides = [1, 1]} : vector<8x128xf32> to vector<8x32xf32>
    %99 = arith.mulf %96, %61 : vector<8x32xf32>
    %100 = arith.mulf %95, %97 : vector<8x32xf32>
    %101 = arith.addf %99, %100 : vector<8x32xf32>
    %102 = math.tanh %101 : vector<8x32xf32>
    %103 = arith.mulf %98, %102 : vector<8x32xf32>
    %104 = vector.extract_strided_slice %17 {offsets = [2, 0, 0], sizes = [1, 8, 128], strides = [1, 1, 1]} : vector<8x8x128xf32> to vector<1x8x128xf32>
    %105 = vector.shape_cast %104 : vector<1x8x128xf32> to vector<8x128xf32>
    %cst_30 = arith.constant dense<0.000000e+00> : vector<8x128xf32>
    %106 = tpu.matmul %83, %10, %cst_30 {dimension_numbers = #tpu.dot_dimension_numbers<[1], [0], [0], [1], [0, 0, 1, 1], [], []>} : vector<8x32xf32>, vector<32x128xf32>, vector<8x128xf32> -> vector<8x128xf32>
    %107 = arith.addf %105, %106 : vector<8x128xf32>
    %108 = vector.broadcast %8 : vector<1x128xf32> to vector<8x128xf32>
    %109 = arith.mulf %107, %108 : vector<8x128xf32>
    %110 = math.tanh %109 : vector<8x128xf32>
    %cst_31 = arith.constant 5.000000e-01 : f32
    %111 = vector.broadcast %cst_31 : f32 to vector<8x128xf32>
    %112 = arith.mulf %111, %110 : vector<8x128xf32>
    %cst_32 = arith.constant 5.000000e-01 : f32
    %113 = vector.broadcast %cst_32 : f32 to vector<8x128xf32>
    %114 = arith.addf %113, %112 : vector<8x128xf32>
    %115 = vector.extract_strided_slice %114 {offsets = [0, 0], sizes = [8, 32], strides = [1, 1]} : vector<8x128xf32> to vector<8x32xf32>
    %116 = vector.extract_strided_slice %114 {offsets = [0, 32], sizes = [8, 32], strides = [1, 1]} : vector<8x128xf32> to vector<8x32xf32>
    %117 = vector.extract_strided_slice %110 {offsets = [0, 64], sizes = [8, 32], strides = [1, 1]} : vector<8x128xf32> to vector<8x32xf32>
    %118 = vector.extract_strided_slice %114 {offsets = [0, 96], sizes = [8, 32], strides = [1, 1]} : vector<8x128xf32> to vector<8x32xf32>
    %119 = arith.mulf %116, %81 : vector<8x32xf32>
    %120 = arith.mulf %115, %117 : vector<8x32xf32>
    %121 = arith.addf %119, %120 : vector<8x32xf32>
    %122 = math.tanh %121 : vector<8x32xf32>
    %123 = arith.mulf %118, %122 : vector<8x32xf32>
    %124 = tpu.concatenate %123, %103 in 1 : vector<8x32xf32>, vector<8x32xf32> -> vector<8x64xf32>
    %cst_33 = arith.constant dense<0.000000e+00> : vector<8x128xf32>
    %125 = tpu.matmul %124, %18, %cst_33 {dimension_numbers = #tpu.dot_dimension_numbers<[1], [0], [0], [1], [0, 0, 1, 1], [], []>} : vector<8x64xf32>, vector<64x128xf32>, vector<8x128xf32> -> vector<8x128xf32>
    %126 = vector.broadcast %19 : vector<1x128xf32> to vector<8x128xf32>
    %127 = arith.addf %125, %126 : vector<8x128xf32>
    %128 = vector.broadcast %8 : vector<1x128xf32> to vector<8x128xf32>
    %129 = arith.mulf %127, %128 : vector<8x128xf32>
    %130 = math.tanh %129 : vector<8x128xf32>
    %cst_34 = arith.constant 5.000000e-01 : f32
    %131 = vector.broadcast %cst_34 : f32 to vector<8x128xf32>
    %132 = arith.mulf %131, %130 : vector<8x128xf32>
    %cst_35 = arith.constant 5.000000e-01 : f32
    %133 = vector.broadcast %cst_35 : f32 to vector<8x128xf32>
    %134 = arith.addf %133, %132 : vector<8x128xf32>
    %135 = vector.extract_strided_slice %134 {offsets = [0, 0], sizes = [8, 32], strides = [1, 1]} : vector<8x128xf32> to vector<8x32xf32>
    %136 = vector.extract_strided_slice %134 {offsets = [0, 32], sizes = [8, 32], strides = [1, 1]} : vector<8x128xf32> to vector<8x32xf32>
    %137 = vector.extract_strided_slice %130 {offsets = [0, 64], sizes = [8, 32], strides = [1, 1]} : vector<8x128xf32> to vector<8x32xf32>
    %138 = vector.extract_strided_slice %134 {offsets = [0, 96], sizes = [8, 32], strides = [1, 1]} : vector<8x128xf32> to vector<8x32xf32>
    %139 = arith.mulf %136, %101 : vector<8x32xf32>
    %140 = arith.mulf %135, %137 : vector<8x32xf32>
    %141 = arith.addf %139, %140 : vector<8x32xf32>
    %142 = math.tanh %141 : vector<8x32xf32>
    %143 = arith.mulf %138, %142 : vector<8x32xf32>
    %144 = vector.extract_strided_slice %17 {offsets = [3, 0, 0], sizes = [1, 8, 128], strides = [1, 1, 1]} : vector<8x8x128xf32> to vector<1x8x128xf32>
    %145 = vector.shape_cast %144 : vector<1x8x128xf32> to vector<8x128xf32>
    %cst_36 = arith.constant dense<0.000000e+00> : vector<8x128xf32>
    %146 = tpu.matmul %123, %10, %cst_36 {dimension_numbers = #tpu.dot_dimension_numbers<[1], [0], [0], [1], [0, 0, 1, 1], [], []>} : vector<8x32xf32>, vector<32x128xf32>, vector<8x128xf32> -> vector<8x128xf32>
    %147 = arith.addf %145, %146 : vector<8x128xf32>
    %148 = vector.broadcast %8 : vector<1x128xf32> to vector<8x128xf32>
    %149 = arith.mulf %147, %148 : vector<8x128xf32>
    %150 = math.tanh %149 : vector<8x128xf32>
    %cst_37 = arith.constant 5.000000e-01 : f32
    %151 = vector.broadcast %cst_37 : f32 to vector<8x128xf32>
    %152 = arith.mulf %151, %150 : vector<8x128xf32>
    %cst_38 = arith.constant 5.000000e-01 : f32
    %153 = vector.broadcast %cst_38 : f32 to vector<8x128xf32>
    %154 = arith.addf %153, %152 : vector<8x128xf32>
    %155 = vector.extract_strided_slice %154 {offsets = [0, 0], sizes = [8, 32], strides = [1, 1]} : vector<8x128xf32> to vector<8x32xf32>
    %156 = vector.extract_strided_slice %154 {offsets = [0, 32], sizes = [8, 32], strides = [1, 1]} : vector<8x128xf32> to vector<8x32xf32>
    %157 = vector.extract_strided_slice %150 {offsets = [0, 64], sizes = [8, 32], strides = [1, 1]} : vector<8x128xf32> to vector<8x32xf32>
    %158 = vector.extract_strided_slice %154 {offsets = [0, 96], sizes = [8, 32], strides = [1, 1]} : vector<8x128xf32> to vector<8x32xf32>
    %159 = arith.mulf %156, %121 : vector<8x32xf32>
    %160 = arith.mulf %155, %157 : vector<8x32xf32>
    %161 = arith.addf %159, %160 : vector<8x32xf32>
    %162 = math.tanh %161 : vector<8x32xf32>
    %163 = arith.mulf %158, %162 : vector<8x32xf32>
    %164 = tpu.concatenate %163, %143 in 1 : vector<8x32xf32>, vector<8x32xf32> -> vector<8x64xf32>
    %cst_39 = arith.constant dense<0.000000e+00> : vector<8x128xf32>
    %165 = tpu.matmul %164, %18, %cst_39 {dimension_numbers = #tpu.dot_dimension_numbers<[1], [0], [0], [1], [0, 0, 1, 1], [], []>} : vector<8x64xf32>, vector<64x128xf32>, vector<8x128xf32> -> vector<8x128xf32>
    %166 = vector.broadcast %19 : vector<1x128xf32> to vector<8x128xf32>
    %167 = arith.addf %165, %166 : vector<8x128xf32>
    %168 = vector.broadcast %8 : vector<1x128xf32> to vector<8x128xf32>
    %169 = arith.mulf %167, %168 : vector<8x128xf32>
    %170 = math.tanh %169 : vector<8x128xf32>
    %cst_40 = arith.constant 5.000000e-01 : f32
    %171 = vector.broadcast %cst_40 : f32 to vector<8x128xf32>
    %172 = arith.mulf %171, %170 : vector<8x128xf32>
    %cst_41 = arith.constant 5.000000e-01 : f32
    %173 = vector.broadcast %cst_41 : f32 to vector<8x128xf32>
    %174 = arith.addf %173, %172 : vector<8x128xf32>
    %175 = vector.extract_strided_slice %174 {offsets = [0, 0], sizes = [8, 32], strides = [1, 1]} : vector<8x128xf32> to vector<8x32xf32>
    %176 = vector.extract_strided_slice %174 {offsets = [0, 32], sizes = [8, 32], strides = [1, 1]} : vector<8x128xf32> to vector<8x32xf32>
    %177 = vector.extract_strided_slice %170 {offsets = [0, 64], sizes = [8, 32], strides = [1, 1]} : vector<8x128xf32> to vector<8x32xf32>
    %178 = vector.extract_strided_slice %174 {offsets = [0, 96], sizes = [8, 32], strides = [1, 1]} : vector<8x128xf32> to vector<8x32xf32>
    %179 = arith.mulf %176, %141 : vector<8x32xf32>
    %180 = arith.mulf %175, %177 : vector<8x32xf32>
    %181 = arith.addf %179, %180 : vector<8x32xf32>
    %182 = math.tanh %181 : vector<8x32xf32>
    %183 = arith.mulf %178, %182 : vector<8x32xf32>
    %184 = vector.extract_strided_slice %17 {offsets = [4, 0, 0], sizes = [1, 8, 128], strides = [1, 1, 1]} : vector<8x8x128xf32> to vector<1x8x128xf32>
    %185 = vector.shape_cast %184 : vector<1x8x128xf32> to vector<8x128xf32>
    %cst_42 = arith.constant dense<0.000000e+00> : vector<8x128xf32>
    %186 = tpu.matmul %163, %10, %cst_42 {dimension_numbers = #tpu.dot_dimension_numbers<[1], [0], [0], [1], [0, 0, 1, 1], [], []>} : vector<8x32xf32>, vector<32x128xf32>, vector<8x128xf32> -> vector<8x128xf32>
    %187 = arith.addf %185, %186 : vector<8x128xf32>
    %188 = vector.broadcast %8 : vector<1x128xf32> to vector<8x128xf32>
    %189 = arith.mulf %187, %188 : vector<8x128xf32>
    %190 = math.tanh %189 : vector<8x128xf32>
    %cst_43 = arith.constant 5.000000e-01 : f32
    %191 = vector.broadcast %cst_43 : f32 to vector<8x128xf32>
    %192 = arith.mulf %191, %190 : vector<8x128xf32>
    %cst_44 = arith.constant 5.000000e-01 : f32
    %193 = vector.broadcast %cst_44 : f32 to vector<8x128xf32>
    %194 = arith.addf %193, %192 : vector<8x128xf32>
    %195 = vector.extract_strided_slice %194 {offsets = [0, 0], sizes = [8, 32], strides = [1, 1]} : vector<8x128xf32> to vector<8x32xf32>
    %196 = vector.extract_strided_slice %194 {offsets = [0, 32], sizes = [8, 32], strides = [1, 1]} : vector<8x128xf32> to vector<8x32xf32>
    %197 = vector.extract_strided_slice %190 {offsets = [0, 64], sizes = [8, 32], strides = [1, 1]} : vector<8x128xf32> to vector<8x32xf32>
    %198 = vector.extract_strided_slice %194 {offsets = [0, 96], sizes = [8, 32], strides = [1, 1]} : vector<8x128xf32> to vector<8x32xf32>
    %199 = arith.mulf %196, %161 : vector<8x32xf32>
    %200 = arith.mulf %195, %197 : vector<8x32xf32>
    %201 = arith.addf %199, %200 : vector<8x32xf32>
    %202 = math.tanh %201 : vector<8x32xf32>
    %203 = arith.mulf %198, %202 : vector<8x32xf32>
    %204 = tpu.concatenate %203, %183 in 1 : vector<8x32xf32>, vector<8x32xf32> -> vector<8x64xf32>
    %cst_45 = arith.constant dense<0.000000e+00> : vector<8x128xf32>
    %205 = tpu.matmul %204, %18, %cst_45 {dimension_numbers = #tpu.dot_dimension_numbers<[1], [0], [0], [1], [0, 0, 1, 1], [], []>} : vector<8x64xf32>, vector<64x128xf32>, vector<8x128xf32> -> vector<8x128xf32>
    %206 = vector.broadcast %19 : vector<1x128xf32> to vector<8x128xf32>
    %207 = arith.addf %205, %206 : vector<8x128xf32>
    %208 = vector.broadcast %8 : vector<1x128xf32> to vector<8x128xf32>
    %209 = arith.mulf %207, %208 : vector<8x128xf32>
    %210 = math.tanh %209 : vector<8x128xf32>
    %cst_46 = arith.constant 5.000000e-01 : f32
    %211 = vector.broadcast %cst_46 : f32 to vector<8x128xf32>
    %212 = arith.mulf %211, %210 : vector<8x128xf32>
    %cst_47 = arith.constant 5.000000e-01 : f32
    %213 = vector.broadcast %cst_47 : f32 to vector<8x128xf32>
    %214 = arith.addf %213, %212 : vector<8x128xf32>
    %215 = vector.extract_strided_slice %214 {offsets = [0, 0], sizes = [8, 32], strides = [1, 1]} : vector<8x128xf32> to vector<8x32xf32>
    %216 = vector.extract_strided_slice %214 {offsets = [0, 32], sizes = [8, 32], strides = [1, 1]} : vector<8x128xf32> to vector<8x32xf32>
    %217 = vector.extract_strided_slice %210 {offsets = [0, 64], sizes = [8, 32], strides = [1, 1]} : vector<8x128xf32> to vector<8x32xf32>
    %218 = vector.extract_strided_slice %214 {offsets = [0, 96], sizes = [8, 32], strides = [1, 1]} : vector<8x128xf32> to vector<8x32xf32>
    %219 = arith.mulf %216, %181 : vector<8x32xf32>
    %220 = arith.mulf %215, %217 : vector<8x32xf32>
    %221 = arith.addf %219, %220 : vector<8x32xf32>
    %222 = math.tanh %221 : vector<8x32xf32>
    %223 = arith.mulf %218, %222 : vector<8x32xf32>
    %224 = vector.extract_strided_slice %17 {offsets = [5, 0, 0], sizes = [1, 8, 128], strides = [1, 1, 1]} : vector<8x8x128xf32> to vector<1x8x128xf32>
    %225 = vector.shape_cast %224 : vector<1x8x128xf32> to vector<8x128xf32>
    %cst_48 = arith.constant dense<0.000000e+00> : vector<8x128xf32>
    %226 = tpu.matmul %203, %10, %cst_48 {dimension_numbers = #tpu.dot_dimension_numbers<[1], [0], [0], [1], [0, 0, 1, 1], [], []>} : vector<8x32xf32>, vector<32x128xf32>, vector<8x128xf32> -> vector<8x128xf32>
    %227 = arith.addf %225, %226 : vector<8x128xf32>
    %228 = vector.broadcast %8 : vector<1x128xf32> to vector<8x128xf32>
    %229 = arith.mulf %227, %228 : vector<8x128xf32>
    %230 = math.tanh %229 : vector<8x128xf32>
    %cst_49 = arith.constant 5.000000e-01 : f32
    %231 = vector.broadcast %cst_49 : f32 to vector<8x128xf32>
    %232 = arith.mulf %231, %230 : vector<8x128xf32>
    %cst_50 = arith.constant 5.000000e-01 : f32
    %233 = vector.broadcast %cst_50 : f32 to vector<8x128xf32>
    %234 = arith.addf %233, %232 : vector<8x128xf32>
    %235 = vector.extract_strided_slice %234 {offsets = [0, 0], sizes = [8, 32], strides = [1, 1]} : vector<8x128xf32> to vector<8x32xf32>
    %236 = vector.extract_strided_slice %234 {offsets = [0, 32], sizes = [8, 32], strides = [1, 1]} : vector<8x128xf32> to vector<8x32xf32>
    %237 = vector.extract_strided_slice %230 {offsets = [0, 64], sizes = [8, 32], strides = [1, 1]} : vector<8x128xf32> to vector<8x32xf32>
    %238 = vector.extract_strided_slice %234 {offsets = [0, 96], sizes = [8, 32], strides = [1, 1]} : vector<8x128xf32> to vector<8x32xf32>
    %239 = arith.mulf %236, %201 : vector<8x32xf32>
    %240 = arith.mulf %235, %237 : vector<8x32xf32>
    %241 = arith.addf %239, %240 : vector<8x32xf32>
    %242 = math.tanh %241 : vector<8x32xf32>
    %243 = arith.mulf %238, %242 : vector<8x32xf32>
    %244 = tpu.concatenate %243, %223 in 1 : vector<8x32xf32>, vector<8x32xf32> -> vector<8x64xf32>
    %cst_51 = arith.constant dense<0.000000e+00> : vector<8x128xf32>
    %245 = tpu.matmul %244, %18, %cst_51 {dimension_numbers = #tpu.dot_dimension_numbers<[1], [0], [0], [1], [0, 0, 1, 1], [], []>} : vector<8x64xf32>, vector<64x128xf32>, vector<8x128xf32> -> vector<8x128xf32>
    %246 = vector.broadcast %19 : vector<1x128xf32> to vector<8x128xf32>
    %247 = arith.addf %245, %246 : vector<8x128xf32>
    %248 = vector.broadcast %8 : vector<1x128xf32> to vector<8x128xf32>
    %249 = arith.mulf %247, %248 : vector<8x128xf32>
    %250 = math.tanh %249 : vector<8x128xf32>
    %cst_52 = arith.constant 5.000000e-01 : f32
    %251 = vector.broadcast %cst_52 : f32 to vector<8x128xf32>
    %252 = arith.mulf %251, %250 : vector<8x128xf32>
    %cst_53 = arith.constant 5.000000e-01 : f32
    %253 = vector.broadcast %cst_53 : f32 to vector<8x128xf32>
    %254 = arith.addf %253, %252 : vector<8x128xf32>
    %255 = vector.extract_strided_slice %254 {offsets = [0, 0], sizes = [8, 32], strides = [1, 1]} : vector<8x128xf32> to vector<8x32xf32>
    %256 = vector.extract_strided_slice %254 {offsets = [0, 32], sizes = [8, 32], strides = [1, 1]} : vector<8x128xf32> to vector<8x32xf32>
    %257 = vector.extract_strided_slice %250 {offsets = [0, 64], sizes = [8, 32], strides = [1, 1]} : vector<8x128xf32> to vector<8x32xf32>
    %258 = vector.extract_strided_slice %254 {offsets = [0, 96], sizes = [8, 32], strides = [1, 1]} : vector<8x128xf32> to vector<8x32xf32>
    %259 = arith.mulf %256, %221 : vector<8x32xf32>
    %260 = arith.mulf %255, %257 : vector<8x32xf32>
    %261 = arith.addf %259, %260 : vector<8x32xf32>
    %262 = math.tanh %261 : vector<8x32xf32>
    %263 = arith.mulf %258, %262 : vector<8x32xf32>
    %264 = vector.extract_strided_slice %17 {offsets = [6, 0, 0], sizes = [1, 8, 128], strides = [1, 1, 1]} : vector<8x8x128xf32> to vector<1x8x128xf32>
    %265 = vector.shape_cast %264 : vector<1x8x128xf32> to vector<8x128xf32>
    %cst_54 = arith.constant dense<0.000000e+00> : vector<8x128xf32>
    %266 = tpu.matmul %243, %10, %cst_54 {dimension_numbers = #tpu.dot_dimension_numbers<[1], [0], [0], [1], [0, 0, 1, 1], [], []>} : vector<8x32xf32>, vector<32x128xf32>, vector<8x128xf32> -> vector<8x128xf32>
    %267 = arith.addf %265, %266 : vector<8x128xf32>
    %268 = vector.broadcast %8 : vector<1x128xf32> to vector<8x128xf32>
    %269 = arith.mulf %267, %268 : vector<8x128xf32>
    %270 = math.tanh %269 : vector<8x128xf32>
    %cst_55 = arith.constant 5.000000e-01 : f32
    %271 = vector.broadcast %cst_55 : f32 to vector<8x128xf32>
    %272 = arith.mulf %271, %270 : vector<8x128xf32>
    %cst_56 = arith.constant 5.000000e-01 : f32
    %273 = vector.broadcast %cst_56 : f32 to vector<8x128xf32>
    %274 = arith.addf %273, %272 : vector<8x128xf32>
    %275 = vector.extract_strided_slice %274 {offsets = [0, 0], sizes = [8, 32], strides = [1, 1]} : vector<8x128xf32> to vector<8x32xf32>
    %276 = vector.extract_strided_slice %274 {offsets = [0, 32], sizes = [8, 32], strides = [1, 1]} : vector<8x128xf32> to vector<8x32xf32>
    %277 = vector.extract_strided_slice %270 {offsets = [0, 64], sizes = [8, 32], strides = [1, 1]} : vector<8x128xf32> to vector<8x32xf32>
    %278 = vector.extract_strided_slice %274 {offsets = [0, 96], sizes = [8, 32], strides = [1, 1]} : vector<8x128xf32> to vector<8x32xf32>
    %279 = arith.mulf %276, %241 : vector<8x32xf32>
    %280 = arith.mulf %275, %277 : vector<8x32xf32>
    %281 = arith.addf %279, %280 : vector<8x32xf32>
    %282 = math.tanh %281 : vector<8x32xf32>
    %283 = arith.mulf %278, %282 : vector<8x32xf32>
    %284 = tpu.concatenate %283, %263 in 1 : vector<8x32xf32>, vector<8x32xf32> -> vector<8x64xf32>
    %cst_57 = arith.constant dense<0.000000e+00> : vector<8x128xf32>
    %285 = tpu.matmul %284, %18, %cst_57 {dimension_numbers = #tpu.dot_dimension_numbers<[1], [0], [0], [1], [0, 0, 1, 1], [], []>} : vector<8x64xf32>, vector<64x128xf32>, vector<8x128xf32> -> vector<8x128xf32>
    %286 = vector.broadcast %19 : vector<1x128xf32> to vector<8x128xf32>
    %287 = arith.addf %285, %286 : vector<8x128xf32>
    %288 = vector.broadcast %8 : vector<1x128xf32> to vector<8x128xf32>
    %289 = arith.mulf %287, %288 : vector<8x128xf32>
    %290 = math.tanh %289 : vector<8x128xf32>
    %cst_58 = arith.constant 5.000000e-01 : f32
    %291 = vector.broadcast %cst_58 : f32 to vector<8x128xf32>
    %292 = arith.mulf %291, %290 : vector<8x128xf32>
    %cst_59 = arith.constant 5.000000e-01 : f32
    %293 = vector.broadcast %cst_59 : f32 to vector<8x128xf32>
    %294 = arith.addf %293, %292 : vector<8x128xf32>
    %295 = vector.extract_strided_slice %294 {offsets = [0, 0], sizes = [8, 32], strides = [1, 1]} : vector<8x128xf32> to vector<8x32xf32>
    %296 = vector.extract_strided_slice %294 {offsets = [0, 32], sizes = [8, 32], strides = [1, 1]} : vector<8x128xf32> to vector<8x32xf32>
    %297 = vector.extract_strided_slice %290 {offsets = [0, 64], sizes = [8, 32], strides = [1, 1]} : vector<8x128xf32> to vector<8x32xf32>
    %298 = vector.extract_strided_slice %294 {offsets = [0, 96], sizes = [8, 32], strides = [1, 1]} : vector<8x128xf32> to vector<8x32xf32>
    %299 = arith.mulf %296, %261 : vector<8x32xf32>
    %300 = arith.mulf %295, %297 : vector<8x32xf32>
    %301 = arith.addf %299, %300 : vector<8x32xf32>
    %302 = math.tanh %301 : vector<8x32xf32>
    %303 = arith.mulf %298, %302 : vector<8x32xf32>
    %304 = vector.extract_strided_slice %17 {offsets = [7, 0, 0], sizes = [1, 8, 128], strides = [1, 1, 1]} : vector<8x8x128xf32> to vector<1x8x128xf32>
    %305 = vector.shape_cast %304 : vector<1x8x128xf32> to vector<8x128xf32>
    %cst_60 = arith.constant dense<0.000000e+00> : vector<8x128xf32>
    %306 = tpu.matmul %283, %10, %cst_60 {dimension_numbers = #tpu.dot_dimension_numbers<[1], [0], [0], [1], [0, 0, 1, 1], [], []>} : vector<8x32xf32>, vector<32x128xf32>, vector<8x128xf32> -> vector<8x128xf32>
    %307 = arith.addf %305, %306 : vector<8x128xf32>
    %308 = vector.broadcast %8 : vector<1x128xf32> to vector<8x128xf32>
    %309 = arith.mulf %307, %308 : vector<8x128xf32>
    %310 = math.tanh %309 : vector<8x128xf32>
    %cst_61 = arith.constant 5.000000e-01 : f32
    %311 = vector.broadcast %cst_61 : f32 to vector<8x128xf32>
    %312 = arith.mulf %311, %310 : vector<8x128xf32>
    %cst_62 = arith.constant 5.000000e-01 : f32
    %313 = vector.broadcast %cst_62 : f32 to vector<8x128xf32>
    %314 = arith.addf %313, %312 : vector<8x128xf32>
    %315 = vector.extract_strided_slice %314 {offsets = [0, 0], sizes = [8, 32], strides = [1, 1]} : vector<8x128xf32> to vector<8x32xf32>
    %316 = vector.extract_strided_slice %314 {offsets = [0, 32], sizes = [8, 32], strides = [1, 1]} : vector<8x128xf32> to vector<8x32xf32>
    %317 = vector.extract_strided_slice %310 {offsets = [0, 64], sizes = [8, 32], strides = [1, 1]} : vector<8x128xf32> to vector<8x32xf32>
    %318 = vector.extract_strided_slice %314 {offsets = [0, 96], sizes = [8, 32], strides = [1, 1]} : vector<8x128xf32> to vector<8x32xf32>
    %319 = arith.mulf %316, %281 : vector<8x32xf32>
    %320 = arith.mulf %315, %317 : vector<8x32xf32>
    %321 = arith.addf %319, %320 : vector<8x32xf32>
    %322 = math.tanh %321 : vector<8x32xf32>
    %323 = arith.mulf %318, %322 : vector<8x32xf32>
    %324 = tpu.concatenate %323, %303 in 1 : vector<8x32xf32>, vector<8x32xf32> -> vector<8x64xf32>
    %cst_63 = arith.constant dense<0.000000e+00> : vector<8x128xf32>
    %325 = tpu.matmul %324, %18, %cst_63 {dimension_numbers = #tpu.dot_dimension_numbers<[1], [0], [0], [1], [0, 0, 1, 1], [], []>} : vector<8x64xf32>, vector<64x128xf32>, vector<8x128xf32> -> vector<8x128xf32>
    %326 = vector.broadcast %19 : vector<1x128xf32> to vector<8x128xf32>
    %327 = arith.addf %325, %326 : vector<8x128xf32>
    %328 = vector.broadcast %8 : vector<1x128xf32> to vector<8x128xf32>
    %329 = arith.mulf %327, %328 : vector<8x128xf32>
    %330 = math.tanh %329 : vector<8x128xf32>
    %cst_64 = arith.constant 5.000000e-01 : f32
    %331 = vector.broadcast %cst_64 : f32 to vector<8x128xf32>
    %332 = arith.mulf %331, %330 : vector<8x128xf32>
    %cst_65 = arith.constant 5.000000e-01 : f32
    %333 = vector.broadcast %cst_65 : f32 to vector<8x128xf32>
    %334 = arith.addf %333, %332 : vector<8x128xf32>
    %335 = vector.extract_strided_slice %334 {offsets = [0, 0], sizes = [8, 32], strides = [1, 1]} : vector<8x128xf32> to vector<8x32xf32>
    %336 = vector.extract_strided_slice %334 {offsets = [0, 32], sizes = [8, 32], strides = [1, 1]} : vector<8x128xf32> to vector<8x32xf32>
    %337 = vector.extract_strided_slice %330 {offsets = [0, 64], sizes = [8, 32], strides = [1, 1]} : vector<8x128xf32> to vector<8x32xf32>
    %338 = vector.extract_strided_slice %334 {offsets = [0, 96], sizes = [8, 32], strides = [1, 1]} : vector<8x128xf32> to vector<8x32xf32>
    %339 = arith.mulf %336, %301 : vector<8x32xf32>
    %340 = arith.mulf %335, %337 : vector<8x32xf32>
    %341 = arith.addf %339, %340 : vector<8x32xf32>
    %342 = math.tanh %341 : vector<8x32xf32>
    %343 = arith.mulf %338, %342 : vector<8x32xf32>
    %c0_66 = arith.constant 0 : index
    %c0_67 = arith.constant 0 : index
    %344 = vector.load %arg6[%c0_66, %c0_67] : memref<1x32xf32, #tpu.memory_space<vmem>>, vector<1x32xf32>
    %345 = vector.broadcast %344 : vector<1x32xf32> to vector<8x32xf32>
    %346 = arith.mulf %343, %345 : vector<8x32xf32>
    %cst_68 = arith.constant dense<0.000000e+00> : vector<8xf32>
    %347 = vector.multi_reduction <add>, %346, %cst_68 [1] : vector<8x32xf32> to vector<8xf32>
    %348 = vector.shape_cast %347 : vector<8xf32> to vector<8x1xf32>
    %c0_69 = arith.constant 0 : index
    %c0_70 = arith.constant 0 : index
    %349 = vector.load %arg7[%c0_69, %c0_70] : memref<1x1xf32, #tpu.memory_space<vmem>>, vector<1x1xf32>
    %350 = vector.broadcast %349 : vector<1x1xf32> to vector<8x1xf32>
    %351 = arith.addf %348, %350 : vector<8x1xf32>
    %c0_71 = arith.constant 0 : index
    %c0_72 = arith.constant 0 : index
    %352 = vector.load %arg8[%c0_71, %c0_72] : memref<8x1xf32, #tpu.memory_space<vmem>>, vector<8x1xf32>
    tpu.vector_store %arg8[%c0_71, %c0_72], %351 {strides = array<i32>} : memref<8x1xf32, #tpu.memory_space<vmem>>, vector<8x1xf32>,
    return
  }
}

</mosaic_0001>

<bundles_post_ra>
// kernel: lstm_forward.1
= control target key start
LH: loop header
LB: loop body
LE: loop exit
PB: predicated region body
PF: predicated region fallthrough
CT: control target
= control target key end

     0   :  { %vm82_vm0 = vcmask 1043456   ;;  %vm57_vm1 = vcmask 31744   ;;  %v2430_v0 = vmov 0.0|0.0   ;;  %vm2431_vm2 = vmmov 0   ;;  %s2434_s19 = smov 64   ;;  %s2436_s26 = smov 96   ;;  %s2862_s2 = inlined_call_operand.vmem [shape: f32[32,128], index: 2, kind: input, shape index: {}]   ;;  %s2863_s1 = inlined_call_operand.vmem [shape: f32[4,128], index: 1, kind: input, shape index: {}]   ;;  %s2864_s0 = inlined_call_operand.vmem [shape: f32[8,8,4], index: 0, kind: input, shape index: {}]   ;;  %s2865_s3 = inlined_call_operand.vmem [shape: f32[1,128], index: 3, kind: input, shape index: {}]   ;;  %s2866_s4 = inlined_call_operand.vmem [shape: f32[64,128], index: 4, kind: input, shape index: {}]   ;;  %s2867_s5 = inlined_call_operand.vmem [shape: f32[1,128], index: 5, kind: input, shape index: {}]   ;;  %s2868_s6 = inlined_call_operand.vmem [shape: f32[1,32], index: 6, kind: input, shape index: {}]   ;;  %s2869_s7 = inlined_call_operand.<no memory space> [shape: f32[1,1], index: 7, kind: input, shape index: {}]   ;;  %s2870_s8 = inlined_call_operand.vmem [shape: f32[8,1], index: 8, kind: output, shape index: {}]  }
   0x1   :  { %2215 = vmatprep.subr.bf16.mxu1 %v2430_v0  ;;  %v38_v1 = vld [vmem:[%s2862_s2] sm:$0xff]  ;;  %v39_v2 = vld [vmem:[%s2862_s2 + $0x8] sm:$0xff]  ;;  %v40_v7 = vld [vmem:[%s2862_s2 + $0x10] sm:$0xff]  ;;  %v2432_v8 = vmov 0.0   ;;  %v31_v11 = vlaneseq  ;;  %v2433_v17 = vmov 0.5   ;;  %vm200_vm6 = vcmask 261120  }
   0x2   :  { %v37_v3 = vld [vmem:[%s2863_s1] sm:$0xf]  ;;  %v2492_v4 = vpack.c.bf16 %v39_v2, %v38_v1  ;;  %v44_v6 = vld [vmem:[%s2864_s0 + $0x8] sm:$0xff]  ;;  %1983 = vmatprep.mubr.msk.f32.mxu1 %vm2431_vm2, %v2432_v8  ;;  %v41_v9 = vld [vmem:[%s2862_s2 + $0x18] sm:$0xff]  ;;  %vm307_vm7 = vcmask 523264   ;;  %vm1806_vm8 = vcmask 7168  }
   0x3   :  { %1961 = vmatprep.subr.msk.mxu0 %vm82_vm0, %v37_v3  ;;  %v43_v5 = vld [vmem:[%s2864_s0] sm:$0xff]  ;;  %v2513_v10 = vpack.c.bf16 %v41_v9, %v40_v7  ;;  %v32_v12 = vand.u32 127, %v31_v11  ;;  %v45_v31 = vld [vmem:[%s2864_s0 + $0x10] sm:$0xff]  ;;  %v46_v32 = vld [vmem:[%s2864_s0 + $0x18] sm:$0xff] }
   0x4   :  { %1962 = vmatpush3.msk.msra.mxu0 %vm82_vm0, %v37_v3  ;;  %1963 = vmatprep.mubr.msk.f32.mxu0 %vm57_vm1, %v43_v5  ;;  %v2527_v14 = vld [vmem:[%s2865_s3] ss:$0 sm:$0xff]  ;;  %s2435_s3 = smov 32   ;;  %v192_v35 = vld [vmem:[%s2866_s4 + $0x8] sm:$0xff]  ;;  %v193_v36 = vld [vmem:[%s2866_s4 + $0x10] sm:$0xff] }
   0x5   :  { %2217 = vmatpush3.bf16.msra.mxu1 %v2492_v4  ;;  %1964 = vmatmul.mubr.msk.f32.vlgmr.msra.gmra.mrb[0].mxu0 %vm57_vm1, %v44_v6  ;;  %vm33_vm3 = vcmp.ge.s32.totalorder %v32_v12, 64  ;;  %vm34_vm4 = vcmp.lt.s32.totalorder %v32_v12, 96  ;;  %v47_v33 = vld [vmem:[%s2864_s0 + $0x20] sm:$0xff]  ;;  %v194_v38 = vld [vmem:[%s2866_s4 + $0x18] sm:$0xff]  ;;  %v48_v39 = vld [vmem:[%s2864_s0 + $0x28] sm:$0xff] }
   0x6   :  { %2218 = vmatprep.subr.bf16.mxu1 %v2430_v0  ;;  %2221 = vmatprep.subr.bf16.mxu0 %v2430_v0  ;;  %vm35_vm5 = vmand %vm33_vm3, %vm34_vm4  ;;  %v191_v34 = vld [vmem:[%s2866_s4] sm:$0xff]  ;;  %v2568_v40 = vpack.c.bf16 %v194_v38, %v193_v36  ;;  %v49_v41 = vld [vmem:[%s2864_s0 + $0x30] sm:$0xff] }
   0x7   :  { %v2530_v18 = vsel %vm35_vm5, 1.0, %v2433_v17  ;;  %1966 = vmatprep.mubr.msk.f32.mxu0 %vm57_vm1, %v45_v31  ;;  %v2557_v37 = vpack.c.bf16 %v192_v35, %v191_v34  ;;  %v195_v42 = vld [vmem:[%s2866_s4 + $0x20] sm:$0xff]  ;;  %v196_v43 = vld [vmem:[%s2866_s4 + $0x28] sm:$0xff]  ;;  %v50_v44 = vld [vmem:[%s2864_s0 + $0x38] sm:$0xff] }
   0x8   :  { %v2588_v45 = vpack.c.bf16 %v196_v43, %v195_v42  ;;  %v197_v46 = vld [vmem:[%s2866_s4 + $0x30] sm:$0xff]  ;;  %v198_v47 = vld [vmem:[%s2866_s4 + $0x38] sm:$0xff]  ;;  %v2644_v60 = vld [vmem:[%s2867_s5] ss:$0 sm:$0xff] }
   0x9   :  { %2220 = vmatpush3.bf16.msra.mxu1 %v2513_v10  ;;  %1967 = vmatmul.mubr.msk.f32.gmra.mrb[2].mxu0 %vm57_vm1, %v46_v32  ;;  %v2604_v49 = vpack.c.bf16 %v198_v47, %v197_v46 }
   0xa   :  { %2239 = vmatprep.subr.bf16.mxu1 %v2430_v0  ;;  %1969 = vmatprep.mubr.msk.f32.mxu0 %vm57_vm1, %v47_v33 }
   0xb   :  { %2223 = vmatpush3.bf16.msra.mxu0 %v2557_v37 }
   0xc   :  { %1984 = vmatmul.mubr.f32.vlgmr.msra.gmra.mrb[0].mxu1 %v2432_v8  ;;  %2224 = vmatprep.subr.bf16.mxu0 %v2430_v0 }
   0xd   :  { %2032 = vmatprep.mubr.msk.f32.mxu1 %vm2431_vm2, %v2432_v8  ;;  %2241 = vmatpush3.bf16.msra.mxu1 %v2557_v37 }
   0xe   :  { %2242 = vmatprep.subr.bf16.mxu1 %v2430_v0  ;;  %1970 = vmatmul.mubr.msk.f32.gmra.mrb[4].mxu0 %vm57_vm1, %v48_v39 }
   0xf   :  { %1972 = vmatprep.mubr.msk.f32.mxu0 %vm57_vm1, %v49_v41  ;;  %2226 = vmatpush3.bf16.msra.mxu0 %v2568_v40 }
  0x10   :  { %2227 = vmatprep.subr.bf16.mxu0 %v2430_v0 }
  0x11   :  { %2244 = vmatpush3.bf16.msra.mxu1 %v2568_v40 }
  0x12   :  { %2245 = vmatprep.subr.bf16.mxu1 %v2430_v0  ;;  %1973 = vmatmul.mubr.msk.f32.gmra.mrb[6].mxu0 %vm57_vm1, %v50_v44 }
  0x13   :  { %2002 = vmatprep.mubr.msk.f32.mxu0 %vm2431_vm2, %v2432_v8  ;;  %2229 = vmatpush3.bf16.msra.mxu0 %v2588_v45 }
  0x14   :  { %2230 = vmatprep.subr.bf16.mxu0 %v2430_v0 }
  0x15   :  { %2247 = vmatpush3.bf16.msra.mxu1 %v2588_v45 }
  0x16   :  { %2248 = vmatprep.subr.bf16.mxu1 %v2430_v0 }
  0x17   :  { %2232 = vmatpush3.bf16.msra.mxu0 %v2604_v49 }
  0x18   :  { %2233 = vmatprep.subr.bf16.mxu0 %v2430_v0 }
  0x19   :  { %2250 = vmatpush3.bf16.msra.mxu1 %v2604_v49 }
  0x1a   :  { %2269 = vmatprep.subr.bf16.mxu1 %v2430_v0 }
  0xd8   :  { %v2522_v13 = vpop.f32.mrb[0].mxu0 }
  0xd9   :  { %v152_v15 = vpop.f32.mrb[1].mxu0  ;;  %v158_v2 = vadd.f32 %v2522_v13, %v2527_v14 }
  0xda   :  { %v153_v16 = vadd.f32 %v2527_v14, %v152_v15 }
  0xdc   :  { %v2614_v52 = vpop.f32.mrb[2].mxu0 }
  0xdd   :  { %v2616_v53 = vpop.f32.mrb[3].mxu0 }
  0xde   :  { %v163_v38 = vadd.f32 %v2527_v14, %v2616_v53 }
  0xdf   :  { %v270_v19 = vpop.f32.mrb[0].mxu1 }
  0xe0   :  { %v274_v20 = vadd.f32 %v270_v19, %v153_v16  ;;  %v1985_v21 = vpop.f32.mrb[1].mxu1 }
  0xe1   :  { %v2618_v54 = vpop.f32.mrb[4].mxu0 }
  0xe2   :  { %v275_v22 = vmul.f32 %v274_v20, %v2530_v18  ;;  %v2620_v55 = vpop.f32.mrb[5].mxu0 }
  0xe4   :  { %2366 = vtanh.f32 %v275_v22 }
  0xe5   :  { %v2622_v56 = vpop.f32.mrb[6].mxu0 }
  0xe6   :  { %v2624_v57 = vpop.f32.mrb[7].mxu0 }
  0xee   :  { %v2367_v23 = vpop.eup %2366 }
  0xef   :  { %281 = vrot.lane.b32.xlu0 %v2367_v23, %s2434_s19  ;;  %v277_v24 = vmul.f32 0.5, %v2367_v23 }
  0xf1   :  { %v278_v25 = vadd.f32 0.5, %v277_v24 }
  0xf3   :  { %v279_v28 = vmul.f32 0.0, %v278_v25 }
 0x161   :  { %v282_v26 = vpop.permute.xlu0 %281 }
 0x162   :  { %v284_v27 = vmul.f32 %v282_v26, %v278_v25 }
 0x164   :  { %286 = vrot.lane.b32.xlu0 %v284_v27, %s2435_s3 }
 0x1d6   :  { %v287_v29 = vpop.permute.xlu0 %286 }
 0x1d7   :  { %v2535_v30 = vadd.f32 %v287_v29, %v279_v28 }
 0x1d9   :  { %2368 = vtanh.f32 %v2535_v30 }
 0x1e3   :  { %v2369_v48 = vpop.eup %2368 }
 0x1e4   :  { %292 = vrot.lane.b32.xlu1 %v2369_v48, %s2434_s19 }
 0x256   :  { %v293_v50 = vpop.permute.xlu1 %292 }
 0x257   :  { %v295_v51 = vmul.f32 %v293_v50, %v278_v25 }
 0x259   :  { %297 = vrot.lane.b32.xlu1 %v295_v51, %s2435_s3 }
 0x2cb   :  { %v298_v58 = vpop.permute.xlu1 %297 }
 0x2cc   :  { %v300_v59 = vsel %vm200_vm6, %v298_v58, 0.0 }
 0x2cd   :  { %2003 = vmatmul.mubr.msk.f32.vlgmr.msra.gmra.mrb[8].mxu0 %vm307_vm7, %v300_v59 }
 0x2ce   :  { %2235 = vmatpush3.bf16.msra.mxu0 %v2492_v4  ;;  %2013 = vmatprep.mubr.msk.f32.mxu0 %vm2431_vm2, %v2432_v8 }
 0x2cf   :  { %2236 = vmatprep.subr.bf16.mxu0 %v2430_v0 }
 0x2d2   :  { %2238 = vmatpush3.bf16.msra.mxu0 %v2513_v10 }
 0x2d3   :  { %2251 = vmatprep.subr.bf16.mxu0 %v2430_v0 }
 0x2d5   :  { %2014 = vmatmul.mubr.msk.f32.vlgmr.msra.gmra.mrb[10].mxu0 %vm200_vm6, %v298_v58 }
 0x2d6   :  { %2253 = vmatpush3.bf16.msra.mxu0 %v2492_v4  ;;  %2043 = vmatprep.mubr.msk.f32.mxu0 %vm2431_vm2, %v2432_v8 }
 0x2d7   :  { %2254 = vmatprep.subr.bf16.mxu0 %v2430_v0 }
 0x2da   :  { %2256 = vmatpush3.bf16.msra.mxu0 %v2513_v10 }
 0x2db   :  { %2257 = vmatprep.subr.bf16.mxu0 %v2430_v0 }
 0x3a0   :  { %v377_v61 = vpop.f32.mrb[8].mxu0 }
 0x3a1   :  { %v378_v62 = vadd.f32 %v2644_v60, %v377_v61  ;;  %v2004_v63 = vpop.f32.mrb[9].mxu0 }
 0x3a3   :  { %v381_v1 = vmul.f32 %v378_v62, %v2530_v18 }
 0x3a5   :  { %2370 = vtanh.f32 %v381_v1 }
 0x3a8   :  { %v470_v3 = vpop.f32.mrb[10].mxu0 }
 0x3a9   :  { %v474_v5 = vadd.f32 %v470_v3, %v158_v2  ;;  %v2015_v6 = vpop.f32.mrb[11].mxu0 }
 0x3ab   :  { %v475_v7 = vmul.f32 %v474_v5, %v2530_v18 }
 0x3ad   :  { %2372 = vtanh.f32 %v475_v7 }
 0x3af   :  { %v2371_v9 = vpop.eup %2370 }
 0x3b0   :  { %387 = vrot.lane.b32.xlu0 %v2371_v9, %s2434_s19  ;;  %v383_v12 = vmul.f32 0.5, %v2371_v9 }
 0x3b2   :  { %v384_v15 = vadd.f32 0.5, %v383_v12 }
 0x3b4   :  { %v385_v22 = vmul.f32 0.0, %v384_v15 }
 0x3b7   :  { %v2373_v11 = vpop.eup %2372 }
 0x3b8   :  { %481 = vrot.lane.b32.xlu1 %v2373_v11, %s2434_s19  ;;  %v477_v19 = vmul.f32 0.5, %v2373_v11 }
 0x3ba   :  { %v478_v13 = vadd.f32 0.5, %v477_v19 }
 0x3bc   :  { %v479_v25 = vmul.f32 %v478_v13, %v2535_v30 }
 0x422   :  { %v388_v16 = vpop.permute.xlu0 %387 }
 0x423   :  { %v390_v17 = vmul.f32 %v388_v16, %v384_v15 }
 0x425   :  { %392 = vrot.lane.b32.xlu0 %v390_v17, %s2435_s3 }
 0x42a   :  { %v482_v20 = vpop.permute.xlu1 %481 }
 0x42b   :  { %v484_v21 = vmul.f32 %v482_v20, %v478_v13 }
 0x42d   :  { %486 = vrot.lane.b32.xlu1 %v484_v21, %s2435_s3 }
 0x497   :  { %v393_v23 = vpop.permute.xlu0 %392 }
 0x498   :  { %v395_v24 = vadd.f32 %v393_v23, %v385_v22  ;;  %v168_v23 = vadd.f32 %v2614_v52, %v2527_v14 }
 0x49a   :  { %2374 = vtanh.f32 %v395_v24 }
 0x49f   :  { %v487_v26 = vpop.permute.xlu1 %486 }
 0x4a0   :  { %v489_v27 = vadd.f32 %v487_v26, %v479_v25 }
 0x4a2   :  { %2376 = vtanh.f32 %v489_v27 }
 0x4a4   :  { %v2375_v28 = vpop.eup %2374 }
 0x4a5   :  { %398 = vrot.lane.b32.xlu0 %v2375_v28, %s2434_s19 }
 0x4ac   :  { %v2377_v29 = vpop.eup %2376 }
 0x4ad   :  { %492 = vrot.lane.b32.xlu1 %v2377_v29, %s2434_s19 }
 0x517   :  { %v399_v31 = vpop.permute.xlu0 %398 }
 0x518   :  { %v401_v32 = vmul.f32 %v399_v31, %v384_v15 }
 0x51a   :  { %501 = vrot.lane.b32.xlu1 %v401_v32, %s2434_s19 }
 0x51f   :  { %v493_v33 = vpop.permute.xlu1 %492 }
 0x520   :  { %v495_v34 = vmul.f32 %v493_v33, %v478_v13 }
 0x522   :  { %497 = vrot.lane.b32.xlu0 %v495_v34, %s2435_s3 }
 0x58c   :  { %v502_v35 = vpop.permute.xlu1 %501 }
 0x594   :  { %v498_v36 = vpop.permute.xlu0 %497 }
 0x595   :  { %v504_v30 = vsel %vm200_vm6, %v498_v36, %v502_v35  ;;  %2044 = vmatmul.mubr.msk.f32.vlgmr.msra.gmra.mrb[12].mxu0 %vm200_vm6, %v498_v36 }
 0x596   :  { %2033 = vmatmul.mubr.msk.f32.vlgmr.msra.gmra.mrb[2].mxu1 %vm307_vm7, %v504_v30  ;;  %2259 = vmatpush3.bf16.msra.mxu0 %v2557_v37 }
 0x597   :  { %2260 = vmatprep.subr.bf16.mxu0 %v2430_v0  ;;  %2271 = vmatpush3.bf16.msra.mxu1 %v2492_v4 }
 0x598   :  { %2272 = vmatprep.subr.bf16.mxu1 %v2430_v0  ;;  %2073 = vmatprep.mubr.msk.f32.mxu1 %vm2431_vm2, %v2432_v8 }
 0x599   :  { %2062 = vmatprep.mubr.msk.f32.mxu0 %vm2431_vm2, %v2432_v8 }
 0x59a   :  { %2262 = vmatpush3.bf16.msra.mxu0 %v2568_v40 }
 0x59b   :  { %2263 = vmatprep.subr.bf16.mxu0 %v2430_v0  ;;  %2274 = vmatpush3.bf16.msra.mxu1 %v2513_v10 }
 0x59c   :  { %2275 = vmatprep.subr.bf16.mxu1 %v2430_v0 }
 0x59e   :  { %2265 = vmatpush3.bf16.msra.mxu0 %v2588_v45 }
 0x59f   :  { %2266 = vmatprep.subr.bf16.mxu0 %v2430_v0 }
 0x5a2   :  { %2268 = vmatpush3.bf16.msra.mxu0 %v2604_v49 }
 0x5a3   :  { %2287 = vmatprep.subr.bf16.mxu0 %v2430_v0 }
 0x668   :  { %v667_v39 = vpop.f32.mrb[12].mxu0 }
 0x669   :  { %v671_v41 = vadd.f32 %v667_v39, %v163_v38  ;;  %v574_v42 = vpop.f32.mrb[2].mxu1  ;;  %v2045_v43 = vpop.f32.mrb[13].mxu0 }
 0x66a   :  { %v575_v44 = vadd.f32 %v2644_v60, %v574_v42  ;;  %v2034_v46 = vpop.f32.mrb[3].mxu1 }
 0x66b   :  { %v672_v47 = vmul.f32 %v671_v41, %v2530_v18 }
 0x66c   :  { %v578_v48 = vmul.f32 %v575_v44, %v2530_v18 }
 0x66d   :  { %2378 = vtanh.f32 %v672_v47 }
 0x66e   :  { %2380 = vtanh.f32 %v578_v48 }
 0x677   :  { %v2379_v50 = vpop.eup %2378 }
 0x678   :  { %v2381_v51 = vpop.eup %2380  ;;  %678 = vrot.lane.b32.xlu1 %v2379_v50, %s2434_s19  ;;  %v674_v53 = vmul.f32 0.5, %v2379_v50 }
 0x679   :  { %584 = vrot.lane.b32.xlu0 %v2381_v51, %s2434_s19  ;;  %v580_v58 = vmul.f32 0.5, %v2381_v51 }
 0x67a   :  { %v675_v59 = vadd.f32 0.5, %v674_v53 }
 0x67b   :  { %v581_v62 = vadd.f32 0.5, %v580_v58 }
 0x67c   :  { %v676_v3 = vmul.f32 %v675_v59, %v489_v27 }
 0x67d   :  { %v582_v6 = vmul.f32 %v581_v62, %v395_v24 }
 0x6ea   :  { %v679_v61 = vpop.permute.xlu1 %678 }
 0x6eb   :  { %v681_v63 = vmul.f32 %v679_v61, %v675_v59  ;;  %v585_v1 = vpop.permute.xlu0 %584 }
 0x6ec   :  { %v587_v2 = vmul.f32 %v585_v1, %v581_v62 }
 0x6ed   :  { %683 = vrot.lane.b32.xlu1 %v681_v63, %s2435_s3 }
 0x6ee   :  { %589 = vrot.lane.b32.xlu0 %v587_v2, %s2435_s3 }
 0x75f   :  { %v684_v5 = vpop.permute.xlu1 %683 }
 0x760   :  { %v686_v7 = vadd.f32 %v684_v5, %v676_v3  ;;  %v590_v9 = vpop.permute.xlu0 %589  ;;  %v173_v3 = vadd.f32 %v2527_v14, %v2620_v55 }
 0x761   :  { %v592_v11 = vadd.f32 %v590_v9, %v582_v6 }
 0x762   :  { %2382 = vtanh.f32 %v686_v7 }
 0x763   :  { %2384 = vtanh.f32 %v592_v11 }
 0x76c   :  { %v2383_v12 = vpop.eup %2382 }
 0x76d   :  { %v2385_v15 = vpop.eup %2384  ;;  %689 = vrot.lane.b32.xlu1 %v2383_v12, %s2434_s19 }
 0x76e   :  { %595 = vrot.lane.b32.xlu0 %v2385_v15, %s2434_s19 }
 0x7df   :  { %v690_v16 = vpop.permute.xlu1 %689 }
 0x7e0   :  { %v692_v17 = vmul.f32 %v690_v16, %v675_v59  ;;  %v596_v19 = vpop.permute.xlu0 %595 }
 0x7e1   :  { %v598_v13 = vmul.f32 %v596_v19, %v581_v62 }
 0x7e2   :  { %694 = vrot.lane.b32.xlu0 %v692_v17, %s2435_s3 }
 0x7e3   :  { %698 = vrot.lane.b32.xlu1 %v598_v13, %s2434_s19 }
 0x854   :  { %v695_v20 = vpop.permute.xlu0 %694 }
 0x855   :  { %2074 = vmatmul.mubr.msk.f32.vlgmr.msra.gmra.mrb[4].mxu1 %vm200_vm6, %v695_v20  ;;  %v699_v21 = vpop.permute.xlu1 %698 }
 0x856   :  { %v701_v22 = vsel %vm200_vm6, %v695_v20, %v699_v21  ;;  %2277 = vmatpush3.bf16.msra.mxu1 %v2557_v37  ;;  %2092 = vmatprep.mubr.msk.f32.mxu1 %vm2431_vm2, %v2432_v8 }
 0x857   :  { %2063 = vmatmul.mubr.msk.f32.vlgmr.msra.gmra.mrb[14].mxu0 %vm307_vm7, %v701_v22  ;;  %2278 = vmatprep.subr.bf16.mxu1 %v2430_v0 }
 0x858   :  { %2289 = vmatpush3.bf16.msra.mxu0 %v2492_v4  ;;  %2103 = vmatprep.mubr.msk.f32.mxu0 %vm2431_vm2, %v2432_v8 }
 0x859   :  { %2290 = vmatprep.subr.bf16.mxu0 %v2430_v0 }
 0x85a   :  { %2280 = vmatpush3.bf16.msra.mxu1 %v2568_v40 }
 0x85b   :  { %2281 = vmatprep.subr.bf16.mxu1 %v2430_v0 }
 0x85c   :  { %2292 = vmatpush3.bf16.msra.mxu0 %v2513_v10 }
 0x85d   :  { %2293 = vmatprep.subr.bf16.mxu0 %v2430_v0 }
 0x85e   :  { %2283 = vmatpush3.bf16.msra.mxu1 %v2588_v45 }
 0x85f   :  { %2284 = vmatprep.subr.bf16.mxu1 %v2430_v0 }
 0x862   :  { %2286 = vmatpush3.bf16.msra.mxu1 %v2604_v49 }
 0x863   :  { %2305 = vmatprep.subr.bf16.mxu1 %v2430_v0 }
 0x928   :  { %v864_v24 = vpop.f32.mrb[4].mxu1 }
 0x929   :  { %v868_v25 = vadd.f32 %v864_v24, %v168_v23  ;;  %v2075_v26 = vpop.f32.mrb[5].mxu1 }
 0x92a   :  { %v771_v27 = vpop.f32.mrb[14].mxu0 }
 0x92b   :  { %v869_v28 = vmul.f32 %v868_v25, %v2530_v18  ;;  %v772_v29 = vadd.f32 %v2644_v60, %v771_v27  ;;  %v2064_v31 = vpop.f32.mrb[15].mxu0 }
 0x92d   :  { %2386 = vtanh.f32 %v869_v28  ;;  %v775_v32 = vmul.f32 %v772_v29, %v2530_v18 }
 0x92f   :  { %2388 = vtanh.f32 %v775_v32 }
 0x937   :  { %v2387_v33 = vpop.eup %2386 }
 0x938   :  { %875 = vrot.lane.b32.xlu1 %v2387_v33, %s2434_s19  ;;  %v871_v52 = vmul.f32 0.5, %v2387_v33 }
 0x939   :  { %v2389_v34 = vpop.eup %2388 }
 0x93a   :  { %781 = vrot.lane.b32.xlu0 %v2389_v34, %s2434_s19  ;;  %v777_v35 = vmul.f32 0.5, %v2389_v34  ;;  %v872_v36 = vadd.f32 0.5, %v871_v52 }
 0x93c   :  { %v778_v39 = vadd.f32 0.5, %v777_v35  ;;  %v873_v43 = vmul.f32 %v872_v36, %v686_v7 }
 0x93e   :  { %v779_v47 = vmul.f32 %v778_v39, %v592_v11 }
 0x9aa   :  { %v876_v30 = vpop.permute.xlu1 %875 }
 0x9ab   :  { %v878_v38 = vmul.f32 %v876_v30, %v872_v36 }
 0x9ac   :  { %v782_v41 = vpop.permute.xlu0 %781 }
 0x9ad   :  { %v784_v42 = vmul.f32 %v782_v41, %v778_v39  ;;  %880 = vrot.lane.b32.xlu1 %v878_v38, %s2435_s3 }
 0x9af   :  { %786 = vrot.lane.b32.xlu0 %v784_v42, %s2435_s3  ;;  %v178_v42 = vadd.f32 %v2618_v54, %v2527_v14 }
 0xa1f   :  { %v881_v44 = vpop.permute.xlu1 %880 }
 0xa20   :  { %v883_v46 = vadd.f32 %v881_v44, %v873_v43 }
 0xa21   :  { %v787_v48 = vpop.permute.xlu0 %786 }
 0xa22   :  { %2390 = vtanh.f32 %v883_v46  ;;  %v789_v50 = vadd.f32 %v787_v48, %v779_v47 }
 0xa24   :  { %2392 = vtanh.f32 %v789_v50 }
 0xa2c   :  { %v2391_v51 = vpop.eup %2390 }
 0xa2d   :  { %886 = vrot.lane.b32.xlu1 %v2391_v51, %s2434_s19 }
 0xa2e   :  { %v2393_v53 = vpop.eup %2392 }
 0xa2f   :  { %792 = vrot.lane.b32.xlu0 %v2393_v53, %s2434_s19 }
 0xa9f   :  { %v887_v58 = vpop.permute.xlu1 %886 }
 0xaa0   :  { %v889_v59 = vmul.f32 %v887_v58, %v872_v36 }
 0xaa1   :  { %v793_v61 = vpop.permute.xlu0 %792 }
 0xaa2   :  { %v795_v62 = vmul.f32 %v793_v61, %v778_v39  ;;  %891 = vrot.lane.b32.xlu0 %v889_v59, %s2435_s3 }
 0xaa4   :  { %895 = vrot.lane.b32.xlu1 %v795_v62, %s2434_s19 }
 0xb14   :  { %v892_v63 = vpop.permute.xlu0 %891 }
 0xb15   :  { %2104 = vmatmul.mubr.msk.f32.vlgmr.msra.gmra.mrb[16].mxu0 %vm200_vm6, %v892_v63 }
 0xb16   :  { %v896_v1 = vpop.permute.xlu1 %895  ;;  %2295 = vmatpush3.bf16.msra.mxu0 %v2557_v37  ;;  %2122 = vmatprep.mubr.msk.f32.mxu0 %vm2431_vm2, %v2432_v8 }
 0xb17   :  { %v898_v2 = vsel %vm200_vm6, %v892_v63, %v896_v1  ;;  %2296 = vmatprep.subr.bf16.mxu0 %v2430_v0 }
 0xb18   :  { %2093 = vmatmul.mubr.msk.f32.vlgmr.msra.gmra.mrb[6].mxu1 %vm307_vm7, %v898_v2 }
 0xb19   :  { %2307 = vmatpush3.bf16.msra.mxu1 %v2492_v4  ;;  %2133 = vmatprep.mubr.msk.f32.mxu1 %vm2431_vm2, %v2432_v8 }
 0xb1a   :  { %2298 = vmatpush3.bf16.msra.mxu0 %v2568_v40  ;;  %2308 = vmatprep.subr.bf16.mxu1 %v2430_v0 }
 0xb1b   :  { %2299 = vmatprep.subr.bf16.mxu0 %v2430_v0 }
 0xb1d   :  { %2310 = vmatpush3.bf16.msra.mxu1 %v2513_v10 }
 0xb1e   :  { %2301 = vmatpush3.bf16.msra.mxu0 %v2588_v45  ;;  %2311 = vmatprep.subr.bf16.mxu1 %v2430_v0 }
 0xb1f   :  { %2302 = vmatprep.subr.bf16.mxu0 %v2430_v0 }
 0xb22   :  { %2304 = vmatpush3.bf16.msra.mxu0 %v2604_v49 }
 0xb23   :  { %2323 = vmatprep.subr.bf16.mxu0 %v2430_v0 }
 0xbe8   :  { %v1061_v5 = vpop.f32.mrb[16].mxu0 }
 0xbe9   :  { %v1065_v6 = vadd.f32 %v1061_v5, %v173_v3  ;;  %v2105_v7 = vpop.f32.mrb[17].mxu0 }
 0xbeb   :  { %v1066_v9 = vmul.f32 %v1065_v6, %v2530_v18  ;;  %v968_v11 = vpop.f32.mrb[6].mxu1 }
 0xbec   :  { %v969_v12 = vadd.f32 %v2644_v60, %v968_v11  ;;  %v2094_v15 = vpop.f32.mrb[7].mxu1 }
 0xbed   :  { %2394 = vtanh.f32 %v1066_v9 }
 0xbee   :  { %v972_v16 = vmul.f32 %v969_v12, %v2530_v18 }
 0xbf0   :  { %2396 = vtanh.f32 %v972_v16 }
 0xbf7   :  { %v2395_v17 = vpop.eup %2394 }
 0xbf8   :  { %1072 = vrot.lane.b32.xlu1 %v2395_v17, %s2434_s19  ;;  %v1068_v55 = vmul.f32 0.5, %v2395_v17 }
 0xbfa   :  { %v2397_v19 = vpop.eup %2396  ;;  %v1069_v20 = vadd.f32 0.5, %v1068_v55 }
 0xbfb   :  { %978 = vrot.lane.b32.xlu0 %v2397_v19, %s2434_s19  ;;  %v974_v13 = vmul.f32 0.5, %v2397_v19 }
 0xbfc   :  { %v1070_v26 = vmul.f32 %v1069_v20, %v883_v46 }
 0xbfd   :  { %v975_v23 = vadd.f32 0.5, %v974_v13 }
 0xbff   :  { %v976_v29 = vmul.f32 %v975_v23, %v789_v50 }
 0xc6a   :  { %v1073_v21 = vpop.permute.xlu1 %1072 }
 0xc6b   :  { %v1075_v22 = vmul.f32 %v1073_v21, %v1069_v20 }
 0xc6d   :  { %v979_v24 = vpop.permute.xlu0 %978  ;;  %1077 = vrot.lane.b32.xlu1 %v1075_v22, %s2435_s3 }
 0xc6e   :  { %v981_v25 = vmul.f32 %v979_v24, %v975_v23 }
 0xc70   :  { %983 = vrot.lane.b32.xlu0 %v981_v25, %s2435_s3 }
 0xcdf   :  { %v1078_v27 = vpop.permute.xlu1 %1077 }
 0xce0   :  { %v1080_v28 = vadd.f32 %v1078_v27, %v1070_v26 }
 0xce2   :  { %2398 = vtanh.f32 %v1080_v28  ;;  %v984_v31 = vpop.permute.xlu0 %983 }
 0xce3   :  { %v986_v32 = vadd.f32 %v984_v31, %v976_v29 }
 0xce5   :  { %2400 = vtanh.f32 %v986_v32 }
 0xcec   :  { %v2399_v33 = vpop.eup %2398 }
 0xced   :  { %1083 = vrot.lane.b32.xlu1 %v2399_v33, %s2434_s19 }
 0xcef   :  { %v2401_v34 = vpop.eup %2400 }
 0xcf0   :  { %989 = vrot.lane.b32.xlu0 %v2401_v34, %s2434_s19 }
 0xd5f   :  { %v1084_v52 = vpop.permute.xlu1 %1083 }
 0xd60   :  { %v1086_v35 = vmul.f32 %v1084_v52, %v1069_v20 }
 0xd62   :  { %v990_v36 = vpop.permute.xlu0 %989  ;;  %1088 = vrot.lane.b32.xlu0 %v1086_v35, %s2435_s3 }
 0xd63   :  { %v992_v30 = vmul.f32 %v990_v36, %v975_v23 }
 0xd65   :  { %1092 = vrot.lane.b32.xlu1 %v992_v30, %s2434_s19 }
 0xdd4   :  { %v1089_v38 = vpop.permute.xlu0 %1088 }
 0xdd5   :  { %2134 = vmatmul.mubr.msk.f32.vlgmr.msra.gmra.mrb[8].mxu1 %vm200_vm6, %v1089_v38 }
 0xdd6   :  { %2313 = vmatpush3.bf16.msra.mxu1 %v2557_v37  ;;  %2152 = vmatprep.mubr.msk.f32.mxu1 %vm2431_vm2, %v2432_v8 }
 0xdd7   :  { %v1093_v39 = vpop.permute.xlu1 %1092  ;;  %2314 = vmatprep.subr.bf16.mxu1 %v2430_v0 }
 0xdd8   :  { %v1095_v41 = vsel %vm200_vm6, %v1089_v38, %v1093_v39 }
 0xdd9   :  { %2123 = vmatmul.mubr.msk.f32.vlgmr.msra.gmra.mrb[18].mxu0 %vm307_vm7, %v1095_v41 }
 0xdda   :  { %2325 = vmatpush3.bf16.msra.mxu0 %v2492_v4  ;;  %2316 = vmatpush3.bf16.msra.mxu1 %v2568_v40 }
 0xddb   :  { %2326 = vmatprep.subr.bf16.mxu0 %v2430_v0  ;;  %2317 = vmatprep.subr.bf16.mxu1 %v2430_v0 }
 0xddc   :  { %2163 = vmatprep.mubr.msk.f32.mxu0 %vm2431_vm2, %v2432_v8 }
 0xdde   :  { %2328 = vmatpush3.bf16.msra.mxu0 %v2513_v10  ;;  %2319 = vmatpush3.bf16.msra.mxu1 %v2588_v45 }
 0xddf   :  { %2320 = vmatprep.subr.bf16.mxu1 %v2430_v0  ;;  %2329 = vmatprep.subr.bf16.mxu0 %v2430_v0 }
 0xde2   :  { %2322 = vmatpush3.bf16.msra.mxu1 %v2604_v49 }
 0xde3   :  { %2341 = vmatprep.subr.bf16.mxu1 %v2430_v0 }
 0xea8   :  { %v1258_v43 = vpop.f32.mrb[8].mxu1 }
 0xea9   :  { %v1262_v44 = vadd.f32 %v1258_v43, %v178_v42  ;;  %v2135_v46 = vpop.f32.mrb[9].mxu1 }
 0xeab   :  { %v1263_v47 = vmul.f32 %v1262_v44, %v2530_v18 }
 0xeac   :  { %v1165_v48 = vpop.f32.mrb[18].mxu0 }
 0xead   :  { %2402 = vtanh.f32 %v1263_v47  ;;  %v1166_v50 = vadd.f32 %v2644_v60, %v1165_v48  ;;  %v2124_v51 = vpop.f32.mrb[19].mxu0 }
 0xeaf   :  { %v1169_v53 = vmul.f32 %v1166_v50, %v2530_v18 }
 0xeb1   :  { %2404 = vtanh.f32 %v1169_v53 }
 0xeb7   :  { %v2403_v58 = vpop.eup %2402 }
 0xeb8   :  { %1269 = vrot.lane.b32.xlu1 %v2403_v58, %s2434_s19  ;;  %v1265_v54 = vmul.f32 0.5, %v2403_v58 }
 0xeba   :  { %v1266_v61 = vadd.f32 0.5, %v1265_v54 }
 0xebb   :  { %v2405_v59 = vpop.eup %2404 }
 0xebc   :  { %1175 = vrot.lane.b32.xlu0 %v2405_v59, %s2434_s19  ;;  %v1171_v62 = vmul.f32 0.5, %v2405_v59  ;;  %v1267_v6 = vmul.f32 %v1266_v61, %v1080_v28 }
 0xebe   :  { %v1172_v2 = vadd.f32 0.5, %v1171_v62 }
 0xec0   :  { %v1173_v11 = vmul.f32 %v1172_v2, %v986_v32 }
 0xf2a   :  { %v1270_v63 = vpop.permute.xlu1 %1269 }
 0xf2b   :  { %v1272_v1 = vmul.f32 %v1270_v63, %v1266_v61 }
 0xf2d   :  { %1274 = vrot.lane.b32.xlu1 %v1272_v1, %s2435_s3 }
 0xf2e   :  { %v1176_v3 = vpop.permute.xlu0 %1175 }
 0xf2f   :  { %v1178_v5 = vmul.f32 %v1176_v3, %v1172_v2 }
 0xf31   :  { %1180 = vrot.lane.b32.xlu0 %v1178_v5, %s2435_s3 }
 0xf9f   :  { %v1275_v7 = vpop.permute.xlu1 %1274 }
 0xfa0   :  { %v1277_v9 = vadd.f32 %v1275_v7, %v1267_v6 }
 0xfa2   :  { %2406 = vtanh.f32 %v1277_v9 }
 0xfa3   :  { %v1181_v12 = vpop.permute.xlu0 %1180 }
 0xfa4   :  { %v1183_v15 = vadd.f32 %v1181_v12, %v1173_v11 }
 0xfa6   :  { %2408 = vtanh.f32 %v1183_v15 }
 0xfac   :  { %v2407_v16 = vpop.eup %2406 }
 0xfad   :  { %1280 = vrot.lane.b32.xlu1 %v2407_v16, %s2434_s19 }
 0xfb0   :  { %v2409_v17 = vpop.eup %2408 }
 0xfb1   :  { %1186 = vrot.lane.b32.xlu0 %v2409_v17, %s2434_s19 }
0x101f   :  { %v1281_v19 = vpop.permute.xlu1 %1280 }
0x1020   :  { %v1283_v55 = vmul.f32 %v1281_v19, %v1266_v61 }
0x1022   :  { %1285 = vrot.lane.b32.xlu0 %v1283_v55, %s2435_s3 }
0x1023   :  { %v1187_v13 = vpop.permute.xlu0 %1186 }
0x1024   :  { %v1189_v20 = vmul.f32 %v1187_v13, %v1172_v2 }
0x1026   :  { %1289 = vrot.lane.b32.xlu1 %v1189_v20, %s2434_s19 }
0x1094   :  { %v1286_v21 = vpop.permute.xlu0 %1285 }
0x1095   :  { %2164 = vmatmul.mubr.msk.f32.vlgmr.msra.gmra.mrb[20].mxu0 %vm200_vm6, %v1286_v21 }
0x1096   :  { %2331 = vmatpush3.bf16.msra.mxu0 %v2557_v37  ;;  %2182 = vmatprep.mubr.msk.f32.mxu0 %vm2431_vm2, %v2432_v8 }
0x1097   :  { %2332 = vmatprep.subr.bf16.mxu0 %v2430_v0 }
0x1098   :  { %v1290_v22 = vpop.permute.xlu1 %1289 }
0x1099   :  { %v1292_v23 = vsel %vm200_vm6, %v1286_v21, %v1290_v22 }
0x109a   :  { %2153 = vmatmul.mubr.msk.f32.vlgmr.msra.gmra.mrb[10].mxu1 %vm307_vm7, %v1292_v23  ;;  %2334 = vmatpush3.bf16.msra.mxu0 %v2568_v40 }
0x109b   :  { %2343 = vmatpush3.bf16.msra.mxu1 %v2492_v4  ;;  %2335 = vmatprep.subr.bf16.mxu0 %v2430_v0  ;;  %v183_v4 = vadd.f32 %v2527_v14, %v2624_v57 }
0x109c   :  { %2344 = vmatprep.subr.bf16.mxu1 %v2430_v0  ;;  %2193 = vmatprep.mubr.msk.f32.mxu1 %vm2431_vm2, %v2432_v8 }
0x109e   :  { %2337 = vmatpush3.bf16.msra.mxu0 %v2588_v45 }
0x109f   :  { %2346 = vmatpush3.bf16.msra.mxu1 %v2513_v10  ;;  %2338 = vmatprep.subr.bf16.mxu0 %v2430_v0 }
0x10a0   :  { %2347 = vmatprep.subr.bf16.mxu1 %v2430_v0 }
0x10a2   :  { %2340 = vmatpush3.bf16.msra.mxu0 %v2604_v49 }
0x1168   :  { %v1455_v24 = vpop.f32.mrb[20].mxu0 }
0x1169   :  { %v1459_v25 = vadd.f32 %v1455_v24, %v183_v4  ;;  %v2165_v26 = vpop.f32.mrb[21].mxu0 }
0x116b   :  { %v1460_v27 = vmul.f32 %v1459_v25, %v2530_v18 }
0x116d   :  { %2410 = vtanh.f32 %v1460_v27  ;;  %v1362_v28 = vpop.f32.mrb[10].mxu1 }
0x116e   :  { %v1363_v29 = vadd.f32 %v2644_v60, %v1362_v28  ;;  %v2154_v31 = vpop.f32.mrb[11].mxu1 }
0x1170   :  { %v1366_v10 = vmul.f32 %v1363_v29, %v2530_v18 }
0x1172   :  { %2412 = vtanh.f32 %v1366_v10 }
0x1177   :  { %v2411_v32 = vpop.eup %2410 }
0x1178   :  { %1466 = vrot.lane.b32.xlu1 %v2411_v32, %s2434_s19  ;;  %v1462_v57 = vmul.f32 0.5, %v2411_v32 }
0x117a   :  { %v1463_v34 = vadd.f32 0.5, %v1462_v57 }
0x117c   :  { %v2413_v33 = vpop.eup %2412  ;;  %v1464_v41 = vmul.f32 %v1463_v34, %v1277_v9 }
0x117d   :  { %1372 = vrot.lane.b32.xlu0 %v2413_v33, %s2434_s19  ;;  %v1368_v35 = vmul.f32 0.5, %v2413_v33 }
0x117f   :  { %v1369_v30 = vadd.f32 0.5, %v1368_v35 }
0x1181   :  { %v1370_v44 = vmul.f32 %v1369_v30, %v1183_v15 }
0x11ea   :  { %v1467_v52 = vpop.permute.xlu1 %1466 }
0x11eb   :  { %v1469_v36 = vmul.f32 %v1467_v52, %v1463_v34 }
0x11ed   :  { %1471 = vrot.lane.b32.xlu1 %v1469_v36, %s2435_s3  ;;  %v1838_v36 = vld [vmem:[%s2868_s6] ss:$0 sm:$0xff] }
0x11ef   :  { %v1373_v38 = vpop.permute.xlu0 %1372 }
0x11f0   :  { %v1375_v39 = vmul.f32 %v1373_v38, %v1369_v30 }
0x11f2   :  { %1377 = vrot.lane.b32.xlu0 %v1375_v39, %s2435_s3  ;;  %v13_v39 = vstv %s2869_s7 }
0x11f3   :  { %14 = vst [vmem:[#allocation2] sm:$0x1] %v13_v39 }
0x125f   :  { %v1472_v42 = vpop.permute.xlu1 %1471 }
0x1260   :  { %v1474_v43 = vadd.f32 %v1472_v42, %v1464_v41 }
0x1262   :  { %2414 = vtanh.f32 %v1474_v43 }
0x1264   :  { %v1378_v46 = vpop.permute.xlu0 %1377 }
0x1265   :  { %v1380_v47 = vadd.f32 %v1378_v46, %v1370_v44 }
0x1267   :  { %2416 = vtanh.f32 %v1380_v47 }
0x126c   :  { %v2415_v48 = vpop.eup %2414 }
0x126d   :  { %1477 = vrot.lane.b32.xlu1 %v2415_v48, %s2434_s19  ;;  %v1839_v48 = vld [vmem:[#allocation2] ss:$0 sm:$0xff] }
0x1271   :  { %v2417_v50 = vpop.eup %2416 }
0x1272   :  { %1383 = vrot.lane.b32.xlu0 %v2417_v50, %s2434_s19 }
0x12df   :  { %v1478_v51 = vpop.permute.xlu1 %1477 }
0x12e0   :  { %v1480_v53 = vmul.f32 %v1478_v51, %v1463_v34 }
0x12e2   :  { %1482 = vrot.lane.b32.xlu0 %v1480_v53, %s2435_s3 }
0x12e4   :  { %v1384_v58 = vpop.permute.xlu0 %1383 }
0x12e5   :  { %v1386_v59 = vmul.f32 %v1384_v58, %v1369_v30 }
0x12e7   :  { %1486 = vrot.lane.b32.xlu1 %v1386_v59, %s2434_s19 }
0x1354   :  { %v1483_v54 = vpop.permute.xlu0 %1482 }
0x1355   :  { %2194 = vmatmul.mubr.msk.f32.vlgmr.msra.gmra.mrb[12].mxu1 %vm200_vm6, %v1483_v54 }
0x1356   :  { %2349 = vmatpush3.bf16.msra.mxu1 %v2557_v37  ;;  %2212 = vmatprep.mubr.msk.f32.mxu1 %vm2431_vm2, %v2432_v8  ;;  %v188_v8 = vadd.f32 %v2622_v56, %v2527_v14 }
0x1357   :  { %2350 = vmatprep.subr.bf16.mxu1 %v2430_v0 }
0x1359   :  { %v1487_v61 = vpop.permute.xlu1 %1486 }
0x135a   :  { %v1489_v62 = vsel %vm200_vm6, %v1483_v54, %v1487_v61  ;;  %2352 = vmatpush3.bf16.msra.mxu1 %v2568_v40 }
0x135b   :  { %2183 = vmatmul.mubr.msk.f32.vlgmr.msra.gmra.mrb[22].mxu0 %vm307_vm7, %v1489_v62  ;;  %2353 = vmatprep.subr.bf16.mxu1 %v2430_v0 }
0x135e   :  { %2355 = vmatpush3.bf16.msra.mxu1 %v2588_v45 }
0x135f   :  { %2356 = vmatprep.subr.bf16.mxu1 %v2430_v0 }
0x1362   :  { %2358 = vmatpush3.bf16.msra.mxu1 %v2604_v49 }
0x1428   :  { %v1652_v37 = vpop.f32.mrb[12].mxu1 }
0x1429   :  { %v1656_v63 = vadd.f32 %v1652_v37, %v188_v8  ;;  %v2195_v1 = vpop.f32.mrb[13].mxu1 }
0x142b   :  { %v1657_v2 = vmul.f32 %v1656_v63, %v2530_v18 }
0x142d   :  { %2418 = vtanh.f32 %v1657_v2 }
0x142e   :  { %v1559_v40 = vpop.f32.mrb[22].mxu0 }
0x142f   :  { %v1560_v3 = vadd.f32 %v2644_v60, %v1559_v40  ;;  %v2184_v5 = vpop.f32.mrb[23].mxu0 }
0x1431   :  { %v1563_v6 = vmul.f32 %v1560_v3, %v2530_v18 }
0x1433   :  { %2420 = vtanh.f32 %v1563_v6 }
0x1437   :  { %v2419_v45 = vpop.eup %2418 }
0x1438   :  { %1663 = vrot.lane.b32.xlu1 %v2419_v45, %s2434_s19  ;;  %v1659_v14 = vmul.f32 0.5, %v2419_v45 }
0x143a   :  { %v1660_v49 = vadd.f32 0.5, %v1659_v14 }
0x143c   :  { %v1661_v16 = vmul.f32 %v1660_v49, %v1474_v43 }
0x143d   :  { %v2421_v0 = vpop.eup %2420 }
0x143e   :  { %1569 = vrot.lane.b32.xlu0 %v2421_v0, %s2434_s19  ;;  %v1565_v9 = vmul.f32 0.5, %v2421_v0 }
0x1440   :  { %v1566_v11 = vadd.f32 0.5, %v1565_v9 }
0x1442   :  { %v1567_v55 = vmul.f32 %v1566_v11, %v1380_v47 }
0x14aa   :  { %v1664_v56 = vpop.permute.xlu1 %1663 }
0x14ab   :  { %v1666_v7 = vmul.f32 %v1664_v56, %v1660_v49 }
0x14ad   :  { %1668 = vrot.lane.b32.xlu1 %v1666_v7, %s2435_s3 }
0x14b0   :  { %v1570_v12 = vpop.permute.xlu0 %1569 }
0x14b1   :  { %v1572_v15 = vmul.f32 %v1570_v12, %v1566_v11 }
0x14b3   :  { %1574 = vrot.lane.b32.xlu0 %v1572_v15, %s2435_s3 }
0x151f   :  { %v1669_v17 = vpop.permute.xlu1 %1668 }
0x1520   :  { %v1671_v19 = vadd.f32 %v1669_v17, %v1661_v16 }
0x1522   :  { %2422 = vtanh.f32 %v1671_v19 }
0x1525   :  { %v1575_v13 = vpop.permute.xlu0 %1574 }
0x1526   :  { %v1577_v20 = vadd.f32 %v1575_v13, %v1567_v55 }
0x1528   :  { %2424 = vtanh.f32 %v1577_v20 }
0x152c   :  { %v2423_v21 = vpop.eup %2422 }
0x152d   :  { %1674 = vrot.lane.b32.xlu1 %v2423_v21, %s2434_s19 }
0x1532   :  { %v2425_v22 = vpop.eup %2424 }
0x1533   :  { %1580 = vrot.lane.b32.xlu0 %v2425_v22, %s2434_s19 }
0x159f   :  { %v1675_v23 = vpop.permute.xlu1 %1674 }
0x15a0   :  { %v1677_v4 = vmul.f32 %v1675_v23, %v1660_v49 }
0x15a2   :  { %1679 = vrot.lane.b32.xlu0 %v1677_v4, %s2435_s3 }
0x15a5   :  { %v1581_v24 = vpop.permute.xlu0 %1580 }
0x15a6   :  { %v1583_v25 = vmul.f32 %v1581_v24, %v1566_v11 }
0x15a8   :  { %1683 = vrot.lane.b32.xlu1 %v1583_v25, %s2434_s19 }
0x1614   :  { %v1680_v26 = vpop.permute.xlu0 %1679 }
0x161a   :  { %v1684_v27 = vpop.permute.xlu1 %1683 }
0x161b   :  { %v1686_v28 = vsel %vm200_vm6, %v1680_v26, %v1684_v27 }
0x161c   :  { %2213 = vmatmul.mubr.msk.f32.vlgmr.msra.gmra.mrb[14].mxu1 %vm307_vm7, %v1686_v28 }
0x16ef   :  { %v1756_v29 = vpop.f32.mrb[14].mxu1 }
0x16f0   :  { %v1757_v31 = vadd.f32 %v2644_v60, %v1756_v29  ;;  %v2214_v10 = vpop.f32.mrb[15].mxu1 }
0x16f2   :  { %v1760_v32 = vmul.f32 %v1757_v31, %v2530_v18 }
0x16f4   :  { %2426 = vtanh.f32 %v1760_v32 }
0x16fe   :  { %v2427_v33 = vpop.eup %2426 }
0x16ff   :  { %1766 = vrot.lane.b32.xlu0 %v2427_v33, %s2434_s19  ;;  %v1762_v57 = vmul.f32 0.5, %v2427_v33 }
0x1701   :  { %v1763_v34 = vadd.f32 0.5, %v1762_v57 }
0x1703   :  { %v1764_v60 = vmul.f32 %v1763_v34, %v1577_v20 }
0x1771   :  { %v1767_v52 = vpop.permute.xlu0 %1766 }
0x1772   :  { %v1769_v35 = vmul.f32 %v1767_v52, %v1763_v34 }
0x1774   :  { %1771 = vrot.lane.b32.xlu1 %v1769_v35, %s2435_s3 }
0x1778   :  { %1787 = vrot.lane.b32.xlu1 %v1838_v36, %s2436_s26 }
0x17e6   :  { %v1772_v30 = vpop.permute.xlu1 %1771 }
0x17e7   :  { %v1774_v38 = vadd.f32 %v1772_v30, %v1764_v60 }
0x17e9   :  { %2428 = vtanh.f32 %v1774_v38 }
0x17ea   :  { %v1788_v42 = vpop.permute.xlu1 %1787 }
0x17f3   :  { %v2429_v18 = vpop.eup %2428 }
0x17f4   :  { %1777 = vrot.lane.b32.xlu0 %v2429_v18, %s2434_s19 }
0x1866   :  { %v1778_v41 = vpop.permute.xlu0 %1777 }
0x1867   :  { %v1780_v43 = vmul.f32 %v1778_v41, %v1763_v34 }
0x1869   :  { %v1790_v44 = vmul.f32 %v1788_v42, %v1780_v43 }
0x186b   :  { %1792 = vrot.lane.b32.xlu0 %v1790_v44, %s2435_s3 }
0x18dd   :  { %v1793_v46 = vpop.permute.xlu0 %1792 }
0x18de   :  { %v1795_v47 = vsel %vm200_vm6, %v1793_v46, 0.0 }
0x18df   :  { %1796 = vadd.xlane.f32.xlu1 %v1795_v47 }
0x196c   :  { %v1797_v50 = vpop.xlane.xlu1 %1796 }
0x196d   :  { %v1805_v51 = vadd.f32 %v1839_v48, %v1797_v50 }
0x196f   :  { %1807 = vst.msk [vmem:[%s2870_s8] sm:$0xff] %vm1806_vm8, %v1805_v51 }

</bundles_post_ra>
